<compile_context>
chip_gen: v7x
topology: tpu7x:2x2x1
jax: 0.10.0
libtpu: 0.0.40
codegen_flags: <defaults>
</compile_context>

<pallas_src>
import math
from functools import partial

import jax
import jax.numpy as jnp
from jax import lax
from jax.experimental import pallas as pl
from jax.experimental.pallas import tpu as pltpu


def _apply_act(z, activation):
    if activation == 'relu':
        return jnp.maximum(z, 0.0)
    elif activation == 'leaky_relu':
        return jnp.where(z > 0, z, 0.2 * z)
    elif activation == 'swish':
        return z * jax.nn.sigmoid(z)
    raise Exception('Incorrect activation!')


# ------------------------------ fused ConvBlock kernel -------------------------------
def conv_block_kernel(x_ref, band1_ref, band2_ref, g1_ref, b1_ref, g2_ref,
                      b2_ref, c1_ref, c2_ref, o_ref, *, activation, eps,
                      height, width):
    M, WC = o_ref.shape                      # M = N*H rows, WC = W*Cout lanes
    KH = band1_ref.shape[0]
    pad = KH // 2
    cout = WC // width
    cnt = float(M * width)                   # N*H*W elements per channel (BN)

    def conv(x_f32, band_ref):
        # 2D 'same' conv as KH accumulated MXU matmuls against block-banded
        # weights.  Height taps = sublane rolls (XLU) of the f32 input with a
        # per-image boundary mask; contraction = W*C_in, output lanes = W*Cout.
        hmod = lax.broadcasted_iota(jnp.int32, x_f32.shape, 0) % height
        acc = None
        for kh in range(KH):                               # static tap loop
            d = kh - pad
            if d == 0:
                lhs = x_f32
            else:
                lhs = pltpu.roll(x_f32, (-d) % M, 0)       # lhs[r] = x[r + d]
                valid = hmod < (height - d) if d > 0 else hmod >= (-d)
                lhs = jnp.where(valid, lhs, 0.0)           # zero across image edge
            part = jnp.dot(lhs.astype(jnp.bfloat16), band_ref[kh],
                           preferred_element_type=jnp.float32)
            acc = part if acc is None else acc + part
        return acc                                         # (M, WC) f32

    def lane_allreduce(v):
        # Cyclic recursive-doubling all-reduce over the W groups of the lane
        # axis (period Cout): after log2(W) roll+add steps every lane holds the
        # per-channel total, already broadcast over w.  XLU + VPU only, no MXU.
        step = cout
        while step < WC:
            v = v + pltpu.roll(v, step, 1)
            step *= 2
        return v

    def bn_act(y, g_ref, b_ref):
        # Training-mode BatchNorm: biased batch stats over N*H*W, per channel.
        t1 = lane_allreduce(jnp.sum(y, axis=0, keepdims=True))       # (1, WC)
        t2 = lane_allreduce(jnp.sum(y * y, axis=0, keepdims=True))
        mean = t1 / cnt
        # TODO(synk): use a centered / Welford-style variance once N*H*W grows
        # enough for E[y^2] - E[y]^2 cancellation in f32 to matter.
        var = jnp.maximum(t2 / cnt - mean * mean, 0.0)
        scale = g_ref[...] * lax.rsqrt(var + eps)                    # (1, WC)
        shift = b_ref[...] - mean * scale
        return _apply_act(y * scale + shift, activation)             # (M, WC)

    # ---------------- stage 1: conv1 -> bn1 -> act -> + emb1 ----------------
    z1 = bn_act(conv(x_ref[...], band1_ref), g1_ref, b1_ref) + c1_ref[...]
    # ---------------- stage 2: conv2 -> bn2 -> act -> + emb2 ----------------
    o_ref[...] = bn_act(conv(z1, band2_ref), g2_ref, b2_ref) + c2_ref[...]


# ------------------------------------ wrapper -----------------------------------------
def _banded_weights(w_hwio, width, pad):
    """B[kh, w'*Cin + c, w*Cout + o] = W[kh, w'-w+pad, c, o] (0 outside the band)."""
    KH, KW, Cin, Cout = w_hwio.shape
    idx = jnp.arange(width)
    bands = []
    for kh in range(KH):
        b = jnp.zeros((width * Cin, width * Cout), jnp.float32)
        for kw in range(KW):
            sel = (idx[:, None] == idx[None, :] + (kw - pad)).astype(jnp.float32)
            b = b + jnp.einsum('pw,co->pcwo', sel,
                               w_hwio[kh, kw]).reshape(width * Cin, width * Cout)
        bands.append(b)
    return jnp.stack(bands).astype(jnp.bfloat16)               # (KH, W*Cin, W*Cout)


def _full_spec(shape):
    nd = len(shape)
    return pl.BlockSpec(tuple(shape), lambda i, _nd=nd: (0,) * _nd)


def conv_block_forward(x_nchw, condition, params, activation='relu', eps=1e-5):
    """ConvBlock.forward: x (N, Cin, H, W), condition (N, classes) -> (N, Cout, H, W)."""
    N, Cin, H, W = x_nchw.shape
    w1, w2 = params['w1_hwio'], params['w2_hwio']
    KH, KW, _, Cout = w1.shape
    assert KH == KW and KH % 2 == 1, 'square, odd conv kernel expected'
    assert W & (W - 1) == 0, 'W must be a power of two for the lane all-reduce'
    pad = KH // 2
    WC_in, WC = W * Cin, W * Cout
    M = N * H

    # NCHW -> (N*H, W*Cin) lane-dense rows.  Kept f32 (rolled in-kernel, cast to
    # bf16 only at the MXU dot).  The NCHW<->NHWC transposes remain only because
    # the module interface is NCHW; between chained ConvBlocks keep this layout.
    x2 = jnp.transpose(x_nchw, (0, 2, 3, 1)).reshape(M, WC_in).astype(jnp.float32)

    # Block-banded conv weights (tiny, built once in plain XLA), bf16 MXU operands.
    band1 = _banded_weights(w1, W, pad)                        # (KH, W*Cin,  W*Cout)
    band2 = _banded_weights(w2, W, pad)                        # (KH, W*Cout, W*Cout)

    # BN affine params pre-tiled onto the (w, c) lane axis (no in-kernel broadcast).
    g1t = jnp.tile(params['bn1_gamma'], W).reshape(1, WC).astype(jnp.float32)
    b1t = jnp.tile(params['bn1_beta'], W).reshape(1, WC).astype(jnp.float32)
    g2t = jnp.tile(params['bn2_gamma'], W).reshape(1, WC).astype(jnp.float32)
    b2t = jnp.tile(params['bn2_beta'], W).reshape(1, WC).astype(jnp.float32)

    # Embedding Linear hoisted to XLA, tiled to the full (N*H, W*Cout) slab.
    c1 = condition @ params['emb1_w'].T + params['emb1_b']     # (N, Cout)
    c2 = condition @ params['emb2_w'].T + params['emb2_b']

    def tile_rows(c):
        cl = jnp.tile(c, (1, W))                               # (N, W*Cout)
        return jnp.broadcast_to(cl[:, None, :], (N, H, WC)).reshape(M, WC)

    c1t, c2t = tile_rows(c1), tile_rows(c2)

    out = pl.pallas_call(
        partial(conv_block_kernel, activation=activation, eps=eps,
                height=H, width=W),
        out_shape=jax.ShapeDtypeStruct((M, WC), jnp.float32),
        grid_spec=pltpu.PrefetchScalarGridSpec(
            num_scalar_prefetch=0,
            grid=(1,),
            in_specs=[
                _full_spec(x2.shape), _full_spec(band1.shape), _full_spec(band2.shape),
                _full_spec(g1t.shape), _full_spec(b1t.shape),
                _full_spec(g2t.shape), _full_spec(b2t.shape),
                _full_spec(c1t.shape), _full_spec(c2t.shape),
            ],
            out_specs=_full_spec((M, WC)),
        ),
        compiler_params=pltpu.CompilerParams(
            dimension_semantics=("arbitrary",),
            vmem_limit_bytes=32 * 1024 * 1024),
    )(x2, band1, band2, g1t, b1t, g2t, b2t, c1t, c2t)

    return jnp.transpose(out.reshape(N, H, W, Cout), (0, 3, 1, 2))   # back to NCHW


# --------------------------- deterministic parameter init ----------------------------
def init_params(key, in_channels, out_channels, size, classes_num):
    k1, k2, k3, k4 = jax.random.split(key, 4)

    def xavier_conv(k, cout, cin, ks):
        fan_in, fan_out = cin * ks * ks, cout * ks * ks
        bound = math.sqrt(6.0 / (fan_in + fan_out))
        w = jax.random.uniform(k, (cout, cin, ks, ks), jnp.float32,
                               -bound, bound)            # PyTorch OIHW
        return jnp.transpose(w, (2, 3, 1, 0))            # -> HWIO for the kernel

    return {
        'w1_hwio': xavier_conv(k1, out_channels, in_channels, size),
        'w2_hwio': xavier_conv(k2, out_channels, out_channels, size),
        'bn1_gamma': jnp.ones((out_channels,), jnp.float32),
        'bn1_beta': jnp.zeros((out_channels,), jnp.float32),
        'bn2_gamma': jnp.ones((out_channels,), jnp.float32),
        'bn2_beta': jnp.zeros((out_channels,), jnp.float32),
        'emb1_w': jax.random.uniform(k3, (out_channels, classes_num),
                                     jnp.float32, -0.1, 0.1),
        'emb1_b': jnp.zeros((out_channels,), jnp.float32),
        'emb2_w': jax.random.uniform(k4, (out_channels, classes_num),
                                     jnp.float32, -0.1, 0.1),
        'emb2_b': jnp.zeros((out_channels,), jnp.float32),
    }


# ----------------------------------- reference ---------------------------------------
def ref_forward(x, cond, p, activation='relu', eps=1e-5):
    def stage(x, w_hwio, gamma, beta, we, be):
        w = jnp.transpose(w_hwio, (3, 2, 0, 1))          # HWIO -> OIHW
        pad = w.shape[2] // 2
        y = lax.conv_general_dilated(
            x, w, (1, 1), [(pad, pad), (pad, pad)],
            dimension_numbers=('NCHW', 'OIHW', 'NCHW'))
        mean = y.mean(axis=(0, 2, 3))
        var = ((y - mean[None, :, None, None]) ** 2).mean(axis=(0, 2, 3))
        z = (y - mean[None, :, None, None]) / jnp.sqrt(var + eps)[None, :, None, None]
        z = z * gamma[None, :, None, None] + beta[None, :, None, None]
        if activation == 'relu':
            z = jnp.maximum(z, 0.0)
        elif activation == 'leaky_relu':
            z = jnp.where(z > 0, z, 0.2 * z)
        elif activation == 'swish':
            z = z * jax.nn.sigmoid(z)
        c = cond @ we.T + be
        return z + c[:, :, None, None]

    x = stage(x, p['w1_hwio'], p['bn1_gamma'], p['bn1_beta'], p['emb1_w'], p['emb1_b'])
    x = stage(x, p['w2_hwio'], p['bn2_gamma'], p['bn2_beta'], p['emb2_w'], p['emb2_b'])
    return x


# -------------------------------------- main ------------------------------------------
if __name__ == "__main__":
    N, Cin, Cout, H, W = 2, 4, 16, 16, 16
    size, classes_num = 3, 32
    activation = 'relu'

    key = jax.random.PRNGKey(0)
    kx, kc, kp = jax.random.split(key, 3)
    x = jax.random.normal(kx, (N, Cin, H, W), jnp.float32)
    condition = jax.random.normal(kc, (N, classes_num), jnp.float32)
    params = init_params(kp, Cin, Cout, size, classes_num)

    out = jax.block_until_ready(conv_block_forward(x, condition, params, activation))
    ref = jax.block_until_ready(ref_forward(x, condition, params, activation))

    assert out.shape == (N, Cout, H, W)
    assert bool(jnp.all(jnp.isfinite(out)))
    max_err = float(jnp.max(jnp.abs(out - ref)))
    # Tolerance accounts for bf16 MXU operands (f32 accumulation) across two
    # conv + BatchNorm stages vs. the all-f32 XLA reference.
    assert max_err < 1e-1, f"mismatch vs reference: {max_err}"

    print("KERNEL_OK")
</pallas_src>

<mosaic_0001>
module attributes {stable_mosaic.version = 11 : i64} {
  func.func @conv_block_kernel(%arg0: i32, %arg1: memref<32x64xf32, #tpu.memory_space<vmem>>, %arg2: memref<3x64x256xbf16, #tpu.memory_space<vmem>>, %arg3: memref<3x256x256xbf16, #tpu.memory_space<vmem>>, %arg4: memref<1x256xf32, #tpu.memory_space<vmem>>, %arg5: memref<1x256xf32, #tpu.memory_space<vmem>>, %arg6: memref<1x256xf32, #tpu.memory_space<vmem>>, %arg7: memref<1x256xf32, #tpu.memory_space<vmem>>, %arg8: memref<32x256xf32, #tpu.memory_space<vmem>>, %arg9: memref<32x256xf32, #tpu.memory_space<vmem>>, %arg10: memref<32x256xf32, #tpu.memory_space<vmem>>) attributes {dimension_semantics = [#tpu.dimension_semantics<arbitrary>], iteration_bounds = array<i64: 1>, scalar_prefetch = 0 : i64, scratch_operands = 0 : i64, tpu.core_type = #tpu.core_type<tc>, window_params = [{pipeline_mode = #tpu.pipeline_mode<synchronous>, transform_indices = @transform_0, window_bounds = array<i64: 32, 64>}, {pipeline_mode = #tpu.pipeline_mode<synchronous>, transform_indices = @transform_1, window_bounds = array<i64: 3, 64, 256>}, {pipeline_mode = #tpu.pipeline_mode<synchronous>, transform_indices = @transform_2, window_bounds = array<i64: 3, 256, 256>}, {pipeline_mode = #tpu.pipeline_mode<synchronous>, transform_indices = @transform_3, window_bounds = array<i64: 1, 256>}, {pipeline_mode = #tpu.pipeline_mode<synchronous>, transform_indices = @transform_4, window_bounds = array<i64: 1, 256>}, {pipeline_mode = #tpu.pipeline_mode<synchronous>, transform_indices = @transform_5, window_bounds = array<i64: 1, 256>}, {pipeline_mode = #tpu.pipeline_mode<synchronous>, transform_indices = @transform_6, window_bounds = array<i64: 1, 256>}, {pipeline_mode = #tpu.pipeline_mode<synchronous>, transform_indices = @transform_7, window_bounds = array<i64: 32, 256>}, {pipeline_mode = #tpu.pipeline_mode<synchronous>, transform_indices = @transform_8, window_bounds = array<i64: 32, 256>}, {pipeline_mode = #tpu.pipeline_mode<synchronous>, transform_indices = @transform_9, window_bounds = array<i64: 32, 256>}]} {
    %c0 = arith.constant 0 : index
    %c0_0 = arith.constant 0 : index
    %0 = vector.load %arg1[%c0, %c0_0] : memref<32x64xf32, #tpu.memory_space<vmem>>, vector<32x64xf32>
    %1 = tpu.iota {dimensions = array<i32: 0>} : vector<32x64xi32>
    %c16_i32 = arith.constant 16 : i32
    %c0_i32 = arith.constant 0 : i32
    %2 = arith.cmpi eq, %c16_i32, %c0_i32 : i32
    %c1_i32 = arith.constant 1 : i32
    %3 = arith.select %2, %c1_i32, %c16_i32 : i32
    %4 = vector.broadcast %3 : i32 to vector<32x64xi32>
    %5 = arith.remsi %1, %4 : vector<32x64xi32>
    %c0_i32_1 = arith.constant 0 : i32
    %6 = vector.broadcast %c0_i32_1 : i32 to vector<32x64xi32>
    %7 = arith.cmpi ne, %5, %6 : vector<32x64xi32>
    %c0_i32_2 = arith.constant 0 : i32
    %8 = vector.broadcast %c0_i32_2 : i32 to vector<32x64xi32>
    %9 = arith.cmpi slt, %5, %8 : vector<32x64xi32>
    %c0_i32_3 = arith.constant 0 : i32
    %10 = arith.cmpi slt, %3, %c0_i32_3 : i32
    %11 = vector.broadcast %10 : i1 to vector<32x64xi1>
    %12 = vector.broadcast %11 : vector<32x64xi1> to vector<32x64xi1>
    %13 = arith.xori %9, %12 : vector<32x64xi1>
    %14 = arith.andi %13, %7 : vector<32x64xi1>
    %15 = vector.broadcast %3 : i32 to vector<32x64xi32>
    %16 = arith.addi %5, %15 : vector<32x64xi32>
    %17 = arith.select %14, %16, %5 : vector<32x64xi1>, vector<32x64xi32>
    %c1_i32_4 = arith.constant 1 : i32
    %18 = tpu.dynamic_rotate %0 by %c1_i32_4 dim 0 : vector<32x64xf32>, i32 -> vector<32x64xf32>
    %c1_i32_5 = arith.constant 1 : i32
    %19 = vector.broadcast %c1_i32_5 : i32 to vector<32x64xi32>
    %20 = arith.cmpi sge, %17, %19 : vector<32x64xi32>
    %cst = arith.constant 0.000000e+00 : f32
    %21 = vector.broadcast %cst : f32 to vector<32x64xf32>
    %22 = arith.select %20, %18, %21 : vector<32x64xi1>, vector<32x64xf32>
    %23 = arith.truncf %22 : vector<32x64xf32> to vector<32x64xbf16>
    %c0_6 = arith.constant 0 : index
    %c0_7 = arith.constant 0 : index
    %c0_8 = arith.constant 0 : index
    %24 = vector.load %arg2[%c0_6, %c0_7, %c0_8] : memref<3x64x256xbf16, #tpu.memory_space<vmem>>, vector<1x64x256xbf16>
    %25 = vector.shape_cast %24 : vector<1x64x256xbf16> to vector<64x256xbf16>
    %cst_9 = arith.constant dense<0.000000e+00> : vector<32x256xf32>
    %26 = tpu.matmul %23, %25, %cst_9 {dimension_numbers = #tpu.dot_dimension_numbers<[1], [0], [0], [1], [0, 0, 1, 1], [], []>} : vector<32x64xbf16>, vector<64x256xbf16>, vector<32x256xf32> -> vector<32x256xf32>
    %27 = arith.truncf %0 : vector<32x64xf32> to vector<32x64xbf16>
    %c1 = arith.constant 1 : index
    %c0_10 = arith.constant 0 : index
    %c0_11 = arith.constant 0 : index
    %28 = vector.load %arg2[%c1, %c0_10, %c0_11] : memref<3x64x256xbf16, #tpu.memory_space<vmem>>, vector<1x64x256xbf16>
    %29 = vector.shape_cast %28 : vector<1x64x256xbf16> to vector<64x256xbf16>
    %cst_12 = arith.constant dense<0.000000e+00> : vector<32x256xf32>
    %30 = tpu.matmul %27, %29, %cst_12 {dimension_numbers = #tpu.dot_dimension_numbers<[1], [0], [0], [1], [0, 0, 1, 1], [], []>} : vector<32x64xbf16>, vector<64x256xbf16>, vector<32x256xf32> -> vector<32x256xf32>
    %31 = arith.addf %26, %30 : vector<32x256xf32>
    %c31_i32 = arith.constant 31 : i32
    %32 = tpu.dynamic_rotate %0 by %c31_i32 dim 0 : vector<32x64xf32>, i32 -> vector<32x64xf32>
    %c15_i32 = arith.constant 15 : i32
    %33 = vector.broadcast %c15_i32 : i32 to vector<32x64xi32>
    %34 = arith.cmpi slt, %17, %33 : vector<32x64xi32>
    %cst_13 = arith.constant 0.000000e+00 : f32
    %35 = vector.broadcast %cst_13 : f32 to vector<32x64xf32>
    %36 = arith.select %34, %32, %35 : vector<32x64xi1>, vector<32x64xf32>
    %37 = arith.truncf %36 : vector<32x64xf32> to vector<32x64xbf16>
    %c2 = arith.constant 2 : index
    %c0_14 = arith.constant 0 : index
    %c0_15 = arith.constant 0 : index
    %38 = vector.load %arg2[%c2, %c0_14, %c0_15] : memref<3x64x256xbf16, #tpu.memory_space<vmem>>, vector<1x64x256xbf16>
    %39 = vector.shape_cast %38 : vector<1x64x256xbf16> to vector<64x256xbf16>
    %cst_16 = arith.constant dense<0.000000e+00> : vector<32x256xf32>
    %40 = tpu.matmul %37, %39, %cst_16 {dimension_numbers = #tpu.dot_dimension_numbers<[1], [0], [0], [1], [0, 0, 1, 1], [], []>} : vector<32x64xbf16>, vector<64x256xbf16>, vector<32x256xf32> -> vector<32x256xf32>
    %41 = arith.addf %31, %40 : vector<32x256xf32>
    %cst_17 = arith.constant dense<0.000000e+00> : vector<256xf32>
    %42 = vector.multi_reduction <add>, %41, %cst_17 [0] : vector<32x256xf32> to vector<256xf32>
    %43 = vector.shape_cast %42 : vector<256xf32> to vector<1x256xf32>
    %c16_i32_18 = arith.constant 16 : i32
    %44 = tpu.dynamic_rotate %43 by %c16_i32_18 dim 1 : vector<1x256xf32>, i32 -> vector<1x256xf32>
    %45 = arith.addf %43, %44 : vector<1x256xf32>
    %c32_i32 = arith.constant 32 : i32
    %46 = tpu.dynamic_rotate %45 by %c32_i32 dim 1 : vector<1x256xf32>, i32 -> vector<1x256xf32>
    %47 = arith.addf %45, %46 : vector<1x256xf32>
    %c64_i32 = arith.constant 64 : i32
    %48 = tpu.dynamic_rotate %47 by %c64_i32 dim 1 : vector<1x256xf32>, i32 -> vector<1x256xf32>
    %49 = arith.addf %47, %48 : vector<1x256xf32>
    %c128_i32 = arith.constant 128 : i32
    %50 = tpu.dynamic_rotate %49 by %c128_i32 dim 1 : vector<1x256xf32>, i32 -> vector<1x256xf32>
    %51 = arith.addf %49, %50 : vector<1x256xf32>
    %52 = arith.mulf %41, %41 : vector<32x256xf32>
    %cst_19 = arith.constant dense<0.000000e+00> : vector<256xf32>
    %53 = vector.multi_reduction <add>, %52, %cst_19 [0] : vector<32x256xf32> to vector<256xf32>
    %54 = vector.shape_cast %53 : vector<256xf32> to vector<1x256xf32>
    %c16_i32_20 = arith.constant 16 : i32
    %55 = tpu.dynamic_rotate %54 by %c16_i32_20 dim 1 : vector<1x256xf32>, i32 -> vector<1x256xf32>
    %56 = arith.addf %54, %55 : vector<1x256xf32>
    %c32_i32_21 = arith.constant 32 : i32
    %57 = tpu.dynamic_rotate %56 by %c32_i32_21 dim 1 : vector<1x256xf32>, i32 -> vector<1x256xf32>
    %58 = arith.addf %56, %57 : vector<1x256xf32>
    %c64_i32_22 = arith.constant 64 : i32
    %59 = tpu.dynamic_rotate %58 by %c64_i32_22 dim 1 : vector<1x256xf32>, i32 -> vector<1x256xf32>
    %60 = arith.addf %58, %59 : vector<1x256xf32>
    %c128_i32_23 = arith.constant 128 : i32
    %61 = tpu.dynamic_rotate %60 by %c128_i32_23 dim 1 : vector<1x256xf32>, i32 -> vector<1x256xf32>
    %62 = arith.addf %60, %61 : vector<1x256xf32>
    %cst_24 = arith.constant 5.120000e+02 : f32
    %63 = vector.broadcast %cst_24 : f32 to vector<1x256xf32>
    %64 = arith.divf %51, %63 : vector<1x256xf32>
    %cst_25 = arith.constant 5.120000e+02 : f32
    %65 = vector.broadcast %cst_25 : f32 to vector<1x256xf32>
    %66 = arith.divf %62, %65 : vector<1x256xf32>
    %67 = arith.mulf %64, %64 : vector<1x256xf32>
    %68 = arith.subf %66, %67 : vector<1x256xf32>
    %cst_26 = arith.constant 0.000000e+00 : f32
    %69 = vector.broadcast %cst_26 : f32 to vector<1x256xf32>
    %70 = arith.maximumf %68, %69 : vector<1x256xf32>
    %c0_27 = arith.constant 0 : index
    %c0_28 = arith.constant 0 : index
    %71 = vector.load %arg4[%c0_27, %c0_28] : memref<1x256xf32, #tpu.memory_space<vmem>>, vector<1x256xf32>
    %cst_29 = arith.constant 9.99999974E-6 : f32
    %72 = vector.broadcast %cst_29 : f32 to vector<1x256xf32>
    %73 = arith.addf %70, %72 : vector<1x256xf32>
    %74 = math.rsqrt %73 : vector<1x256xf32>
    %75 = arith.mulf %71, %74 : vector<1x256xf32>
    %c0_30 = arith.constant 0 : index
    %c0_31 = arith.constant 0 : index
    %76 = vector.load %arg5[%c0_30, %c0_31] : memref<1x256xf32, #tpu.memory_space<vmem>>, vector<1x256xf32>
    %77 = arith.mulf %64, %75 : vector<1x256xf32>
    %78 = arith.subf %76, %77 : vector<1x256xf32>
    %79 = vector.broadcast %75 : vector<1x256xf32> to vector<32x256xf32>
    %80 = arith.mulf %41, %79 : vector<32x256xf32>
    %81 = vector.broadcast %78 : vector<1x256xf32> to vector<32x256xf32>
    %82 = arith.addf %80, %81 : vector<32x256xf32>
    %cst_32 = arith.constant 0.000000e+00 : f32
    %83 = vector.broadcast %cst_32 : f32 to vector<32x256xf32>
    %84 = arith.maximumf %82, %83 : vector<32x256xf32>
    %c0_33 = arith.constant 0 : index
    %c0_34 = arith.constant 0 : index
    %85 = vector.load %arg8[%c0_33, %c0_34] : memref<32x256xf32, #tpu.memory_space<vmem>>, vector<32x256xf32>
    %86 = arith.addf %84, %85 : vector<32x256xf32>
    %87 = tpu.iota {dimensions = array<i32: 0>} : vector<32x256xi32>
    %c16_i32_35 = arith.constant 16 : i32
    %c0_i32_36 = arith.constant 0 : i32
    %88 = arith.cmpi eq, %c16_i32_35, %c0_i32_36 : i32
    %c1_i32_37 = arith.constant 1 : i32
    %89 = arith.select %88, %c1_i32_37, %c16_i32_35 : i32
    %90 = vector.broadcast %89 : i32 to vector<32x256xi32>
    %91 = arith.remsi %87, %90 : vector<32x256xi32>
    %c0_i32_38 = arith.constant 0 : i32
    %92 = vector.broadcast %c0_i32_38 : i32 to vector<32x256xi32>
    %93 = arith.cmpi ne, %91, %92 : vector<32x256xi32>
    %c0_i32_39 = arith.constant 0 : i32
    %94 = vector.broadcast %c0_i32_39 : i32 to vector<32x256xi32>
    %95 = arith.cmpi slt, %91, %94 : vector<32x256xi32>
    %c0_i32_40 = arith.constant 0 : i32
    %96 = arith.cmpi slt, %89, %c0_i32_40 : i32
    %97 = vector.broadcast %96 : i1 to vector<32x256xi1>
    %98 = vector.broadcast %97 : vector<32x256xi1> to vector<32x256xi1>
    %99 = arith.xori %95, %98 : vector<32x256xi1>
    %100 = arith.andi %99, %93 : vector<32x256xi1>
    %101 = vector.broadcast %89 : i32 to vector<32x256xi32>
    %102 = arith.addi %91, %101 : vector<32x256xi32>
    %103 = arith.select %100, %102, %91 : vector<32x256xi1>, vector<32x256xi32>
    %c1_i32_41 = arith.constant 1 : i32
    %104 = tpu.dynamic_rotate %86 by %c1_i32_41 dim 0 : vector<32x256xf32>, i32 -> vector<32x256xf32>
    %c1_i32_42 = arith.constant 1 : i32
    %105 = vector.broadcast %c1_i32_42 : i32 to vector<32x256xi32>
    %106 = arith.cmpi sge, %103, %105 : vector<32x256xi32>
    %cst_43 = arith.constant 0.000000e+00 : f32
    %107 = vector.broadcast %cst_43 : f32 to vector<32x256xf32>
    %108 = arith.select %106, %104, %107 : vector<32x256xi1>, vector<32x256xf32>
    %109 = arith.truncf %108 : vector<32x256xf32> to vector<32x256xbf16>
    %c0_44 = arith.constant 0 : index
    %c0_45 = arith.constant 0 : index
    %c0_46 = arith.constant 0 : index
    %110 = vector.load %arg3[%c0_44, %c0_45, %c0_46] : memref<3x256x256xbf16, #tpu.memory_space<vmem>>, vector<1x256x256xbf16>
    %111 = vector.shape_cast %110 : vector<1x256x256xbf16> to vector<256x256xbf16>
    %cst_47 = arith.constant dense<0.000000e+00> : vector<32x256xf32>
    %112 = tpu.matmul %109, %111, %cst_47 {dimension_numbers = #tpu.dot_dimension_numbers<[1], [0], [0], [1], [0, 0, 1, 1], [], []>} : vector<32x256xbf16>, vector<256x256xbf16>, vector<32x256xf32> -> vector<32x256xf32>
    %113 = arith.truncf %86 : vector<32x256xf32> to vector<32x256xbf16>
    %c1_48 = arith.constant 1 : index
    %c0_49 = arith.constant 0 : index
    %c0_50 = arith.constant 0 : index
    %114 = vector.load %arg3[%c1_48, %c0_49, %c0_50] : memref<3x256x256xbf16, #tpu.memory_space<vmem>>, vector<1x256x256xbf16>
    %115 = vector.shape_cast %114 : vector<1x256x256xbf16> to vector<256x256xbf16>
    %cst_51 = arith.constant dense<0.000000e+00> : vector<32x256xf32>
    %116 = tpu.matmul %113, %115, %cst_51 {dimension_numbers = #tpu.dot_dimension_numbers<[1], [0], [0], [1], [0, 0, 1, 1], [], []>} : vector<32x256xbf16>, vector<256x256xbf16>, vector<32x256xf32> -> vector<32x256xf32>
    %117 = arith.addf %112, %116 : vector<32x256xf32>
    %c31_i32_52 = arith.constant 31 : i32
    %118 = tpu.dynamic_rotate %86 by %c31_i32_52 dim 0 : vector<32x256xf32>, i32 -> vector<32x256xf32>
    %c15_i32_53 = arith.constant 15 : i32
    %119 = vector.broadcast %c15_i32_53 : i32 to vector<32x256xi32>
    %120 = arith.cmpi slt, %103, %119 : vector<32x256xi32>
    %cst_54 = arith.constant 0.000000e+00 : f32
    %121 = vector.broadcast %cst_54 : f32 to vector<32x256xf32>
    %122 = arith.select %120, %118, %121 : vector<32x256xi1>, vector<32x256xf32>
    %123 = arith.truncf %122 : vector<32x256xf32> to vector<32x256xbf16>
    %c2_55 = arith.constant 2 : index
    %c0_56 = arith.constant 0 : index
    %c0_57 = arith.constant 0 : index
    %124 = vector.load %arg3[%c2_55, %c0_56, %c0_57] : memref<3x256x256xbf16, #tpu.memory_space<vmem>>, vector<1x256x256xbf16>
    %125 = vector.shape_cast %124 : vector<1x256x256xbf16> to vector<256x256xbf16>
    %cst_58 = arith.constant dense<0.000000e+00> : vector<32x256xf32>
    %126 = tpu.matmul %123, %125, %cst_58 {dimension_numbers = #tpu.dot_dimension_numbers<[1], [0], [0], [1], [0, 0, 1, 1], [], []>} : vector<32x256xbf16>, vector<256x256xbf16>, vector<32x256xf32> -> vector<32x256xf32>
    %127 = arith.addf %117, %126 : vector<32x256xf32>
    %cst_59 = arith.constant dense<0.000000e+00> : vector<256xf32>
    %128 = vector.multi_reduction <add>, %127, %cst_59 [0] : vector<32x256xf32> to vector<256xf32>
    %129 = vector.shape_cast %128 : vector<256xf32> to vector<1x256xf32>
    %c16_i32_60 = arith.constant 16 : i32
    %130 = tpu.dynamic_rotate %129 by %c16_i32_60 dim 1 : vector<1x256xf32>, i32 -> vector<1x256xf32>
    %131 = arith.addf %129, %130 : vector<1x256xf32>
    %c32_i32_61 = arith.constant 32 : i32
    %132 = tpu.dynamic_rotate %131 by %c32_i32_61 dim 1 : vector<1x256xf32>, i32 -> vector<1x256xf32>
    %133 = arith.addf %131, %132 : vector<1x256xf32>
    %c64_i32_62 = arith.constant 64 : i32
    %134 = tpu.dynamic_rotate %133 by %c64_i32_62 dim 1 : vector<1x256xf32>, i32 -> vector<1x256xf32>
    %135 = arith.addf %133, %134 : vector<1x256xf32>
    %c128_i32_63 = arith.constant 128 : i32
    %136 = tpu.dynamic_rotate %135 by %c128_i32_63 dim 1 : vector<1x256xf32>, i32 -> vector<1x256xf32>
    %137 = arith.addf %135, %136 : vector<1x256xf32>
    %138 = arith.mulf %127, %127 : vector<32x256xf32>
    %cst_64 = arith.constant dense<0.000000e+00> : vector<256xf32>
    %139 = vector.multi_reduction <add>, %138, %cst_64 [0] : vector<32x256xf32> to vector<256xf32>
    %140 = vector.shape_cast %139 : vector<256xf32> to vector<1x256xf32>
    %c16_i32_65 = arith.constant 16 : i32
    %141 = tpu.dynamic_rotate %140 by %c16_i32_65 dim 1 : vector<1x256xf32>, i32 -> vector<1x256xf32>
    %142 = arith.addf %140, %141 : vector<1x256xf32>
    %c32_i32_66 = arith.constant 32 : i32
    %143 = tpu.dynamic_rotate %142 by %c32_i32_66 dim 1 : vector<1x256xf32>, i32 -> vector<1x256xf32>
    %144 = arith.addf %142, %143 : vector<1x256xf32>
    %c64_i32_67 = arith.constant 64 : i32
    %145 = tpu.dynamic_rotate %144 by %c64_i32_67 dim 1 : vector<1x256xf32>, i32 -> vector<1x256xf32>
    %146 = arith.addf %144, %145 : vector<1x256xf32>
    %c128_i32_68 = arith.constant 128 : i32
    %147 = tpu.dynamic_rotate %146 by %c128_i32_68 dim 1 : vector<1x256xf32>, i32 -> vector<1x256xf32>
    %148 = arith.addf %146, %147 : vector<1x256xf32>
    %cst_69 = arith.constant 5.120000e+02 : f32
    %149 = vector.broadcast %cst_69 : f32 to vector<1x256xf32>
    %150 = arith.divf %137, %149 : vector<1x256xf32>
    %cst_70 = arith.constant 5.120000e+02 : f32
    %151 = vector.broadcast %cst_70 : f32 to vector<1x256xf32>
    %152 = arith.divf %148, %151 : vector<1x256xf32>
    %153 = arith.mulf %150, %150 : vector<1x256xf32>
    %154 = arith.subf %152, %153 : vector<1x256xf32>
    %cst_71 = arith.constant 0.000000e+00 : f32
    %155 = vector.broadcast %cst_71 : f32 to vector<1x256xf32>
    %156 = arith.maximumf %154, %155 : vector<1x256xf32>
    %c0_72 = arith.constant 0 : index
    %c0_73 = arith.constant 0 : index
    %157 = vector.load %arg6[%c0_72, %c0_73] : memref<1x256xf32, #tpu.memory_space<vmem>>, vector<1x256xf32>
    %cst_74 = arith.constant 9.99999974E-6 : f32
    %158 = vector.broadcast %cst_74 : f32 to vector<1x256xf32>
    %159 = arith.addf %156, %158 : vector<1x256xf32>
    %160 = math.rsqrt %159 : vector<1x256xf32>
    %161 = arith.mulf %157, %160 : vector<1x256xf32>
    %c0_75 = arith.constant 0 : index
    %c0_76 = arith.constant 0 : index
    %162 = vector.load %arg7[%c0_75, %c0_76] : memref<1x256xf32, #tpu.memory_space<vmem>>, vector<1x256xf32>
    %163 = arith.mulf %150, %161 : vector<1x256xf32>
    %164 = arith.subf %162, %163 : vector<1x256xf32>
    %165 = vector.broadcast %161 : vector<1x256xf32> to vector<32x256xf32>
    %166 = arith.mulf %127, %165 : vector<32x256xf32>
    %167 = vector.broadcast %164 : vector<1x256xf32> to vector<32x256xf32>
    %168 = arith.addf %166, %167 : vector<32x256xf32>
    %cst_77 = arith.constant 0.000000e+00 : f32
    %169 = vector.broadcast %cst_77 : f32 to vector<32x256xf32>
    %170 = arith.maximumf %168, %169 : vector<32x256xf32>
    %c0_78 = arith.constant 0 : index
    %c0_79 = arith.constant 0 : index
    %171 = vector.load %arg9[%c0_78, %c0_79] : memref<32x256xf32, #tpu.memory_space<vmem>>, vector<32x256xf32>
    %172 = arith.addf %170, %171 : vector<32x256xf32>
    %c0_80 = arith.constant 0 : index
    %c0_81 = arith.constant 0 : index
    %173 = vector.load %arg10[%c0_80, %c0_81] : memref<32x256xf32, #tpu.memory_space<vmem>>, vector<32x256xf32>
    tpu.vector_store %arg10[%c0_80, %c0_81], %172 {strides = array<i32>} : memref<32x256xf32, #tpu.memory_space<vmem>>, vector<32x256xf32>,
    return
  }
  func.func @transform_0(%arg0: i32) -> (i32, i32) {
    %c0_i32 = arith.constant 0 : i32
    %c0_i32_0 = arith.constant 0 : i32
    %c0_i32_1 = arith.constant 0 : i32
    return %c0_i32, %c0_i32_0 : i32, i32
  }
  func.func @transform_1(%arg0: i32) -> (i32, i32, i32) {
    %c0_i32 = arith.constant 0 : i32
    %c0_i32_0 = arith.constant 0 : i32
    %c0_i32_1 = arith.constant 0 : i32
    %c0_i32_2 = arith.constant 0 : i32
    return %c0_i32, %c0_i32_0, %c0_i32_1 : i32, i32, i32
  }
  func.func @transform_2(%arg0: i32) -> (i32, i32, i32) {
    %c0_i32 = arith.constant 0 : i32
    %c0_i32_0 = arith.constant 0 : i32
    %c0_i32_1 = arith.constant 0 : i32
    %c0_i32_2 = arith.constant 0 : i32
    return %c0_i32, %c0_i32_0, %c0_i32_1 : i32, i32, i32
  }
  func.func @transform_3(%arg0: i32) -> (i32, i32) {
    %c0_i32 = arith.constant 0 : i32
    %c0_i32_0 = arith.constant 0 : i32
    %c0_i32_1 = arith.constant 0 : i32
    return %c0_i32, %c0_i32_0 : i32, i32
  }
  func.func @transform_4(%arg0: i32) -> (i32, i32) {
    %c0_i32 = arith.constant 0 : i32
    %c0_i32_0 = arith.constant 0 : i32
    %c0_i32_1 = arith.constant 0 : i32
    return %c0_i32, %c0_i32_0 : i32, i32
  }
  func.func @transform_5(%arg0: i32) -> (i32, i32) {
    %c0_i32 = arith.constant 0 : i32
    %c0_i32_0 = arith.constant 0 : i32
    %c0_i32_1 = arith.constant 0 : i32
    return %c0_i32, %c0_i32_0 : i32, i32
  }
  func.func @transform_6(%arg0: i32) -> (i32, i32) {
    %c0_i32 = arith.constant 0 : i32
    %c0_i32_0 = arith.constant 0 : i32
    %c0_i32_1 = arith.constant 0 : i32
    return %c0_i32, %c0_i32_0 : i32, i32
  }
  func.func @transform_7(%arg0: i32) -> (i32, i32) {
    %c0_i32 = arith.constant 0 : i32
    %c0_i32_0 = arith.constant 0 : i32
    %c0_i32_1 = arith.constant 0 : i32
    return %c0_i32, %c0_i32_0 : i32, i32
  }
  func.func @transform_8(%arg0: i32) -> (i32, i32) {
    %c0_i32 = arith.constant 0 : i32
    %c0_i32_0 = arith.constant 0 : i32
    %c0_i32_1 = arith.constant 0 : i32
    return %c0_i32, %c0_i32_0 : i32, i32
  }
  func.func @transform_9(%arg0: i32) -> (i32, i32) {
    %c0_i32 = arith.constant 0 : i32
    %c0_i32_0 = arith.constant 0 : i32
    %c0_i32_1 = arith.constant 0 : i32
    return %c0_i32, %c0_i32_0 : i32, i32
  }
}

</mosaic_0001>

<bundles_post_ra>
// kernel: tpu_custom_call.1
= control target key start
LH: loop header
LB: loop body
LE: loop exit
PB: predicated region body
PF: predicated region fallthrough
CT: control target
= control target key end

     0   :  { %14 = vsyncpa [#allocation3], 0  ;;  %s2880_s0 = inlined_call_operand.hbm [shape: f32[32,64], index: 0, kind: input, shape index: {}]   ;;  %s2881_s1 = inlined_call_operand.hbm [shape: bf16[3,64,256], index: 1, kind: input, shape index: {}]   ;;  %s2882_s2 = inlined_call_operand.hbm [shape: bf16[3,256,256], index: 2, kind: input, shape index: {}]   ;;  %s2883_s3 = inlined_call_operand.vmem [shape: f32[1,256], index: 3, kind: input, shape index: {}]   ;;  %s2884_s4 = inlined_call_operand.vmem [shape: f32[1,256], index: 4, kind: input, shape index: {}]   ;;  %s2885_s5 = inlined_call_operand.vmem [shape: f32[1,256], index: 5, kind: input, shape index: {}]   ;;  %s2886_s6 = inlined_call_operand.vmem [shape: f32[1,256], index: 6, kind: input, shape index: {}]   ;;  %s2887_s7 = inlined_call_operand.hbm [shape: f32[32,256], index: 7, kind: input, shape index: {}]   ;;  %s2888_s8 = inlined_call_operand.hbm [shape: f32[32,256], index: 8, kind: input, shape index: {}]   ;;  %s2889_s9 = inlined_call_operand.hbm [shape: f32[32,256], index: 9, kind: output, shape index: {}]  }
   0x1   :  { %15 = vsyncpa [#allocation6], 0 }
   0x2   :  { %16 = vsyncpa [#allocation9], 0 }
   0x3   :  { %17 = vsyncpa [#allocation4], 0  ;;  %s2298_s30 = smov [#allocation5]   ;;  %s2299_s11 = smov [#allocation8]  }
   0x4   :  { %s35_s10 = sshll.u32 %s2298_s30, 4  ;;  %s67_s12 = sshll.u32 %s2299_s11, 4  ;;  %s36_s10 = int_to_ptr.vmem [resolvable:$true] %s35_s10  ;;  %s2363_s12 = int_to_ptr.vmem [resolvable:$true] %s67_s12 }
   0x5   :  { %s2158_s15 = scalar_lea.hbm %s2881_s1, 3072 }
   0x6   :  { %p2159_p0 = scmp.ne.s32.totalorder %s2881_s1, %s2158_s15  ;;  %p2162_p1 = scmp.lt.u32.totalorder %s2158_s15, %s2881_s1 }
   0x8   :  { %p2164_p2 = pnand %p2162_p1, %p2159_p0 }
   0xa   :  { %2167 = shalt.err (!%p2164_p2)
}
   0xb   :  { %s2168_s20 = scalar_lea.vmem %s36_s10, 3072  ;;  %p2173_p4 = scmp.lt.s32.totalorder %s36_s10, %s36_s10 }
   0xc   :  { %p2169_p3 = scmp.ne.s32.totalorder %s36_s10, %s2168_s20  ;;  %p2174_p5 = scmp.lt.s32.totalorder %s2168_s20, %s2168_s20 }
   0xe   :  { %p2175_p6 = por %p2174_p5, %p2173_p4 }
  0x10   :  { %p2176_p7 = pnand %p2175_p6, %p2169_p3 }
  0x12   :  { %2179 = shalt.err (!%p2176_p7)
}
  0x13   :  { %s2300_s21 = smov 128   ;;  %s2301_s22 = smov 8  }
  0x14   :  { %41 = dma.hbm_to_vmem [thread:$0]  %s2881_s1, 3072, %s36_s10, [#allocation6], %s2300_s21, %s2300_s21, %s2301_s22  }
  0x15   :  { %s2180_s27 = scalar_lea.hbm %s2887_s7, 1024 }
  0x16   :  { %p2181_p8 = scmp.ne.s32.totalorder %s2887_s7, %s2180_s27  ;;  %p2184_p9 = scmp.lt.u32.totalorder %s2180_s27, %s2887_s7 }
  0x18   :  { %p2186_p10 = pnand %p2184_p9, %p2181_p8 }
  0x1a   :  { %2189 = shalt.err (!%p2186_p10)
}
  0x1b   :  { %s2190_s13 = scalar_lea.vmem %s2363_s12, 1024  ;;  %p2195_p12 = scmp.lt.s32.totalorder %s2363_s12, %s2363_s12 }
  0x1c   :  { %p2191_p11 = scmp.ne.s32.totalorder %s2363_s12, %s2190_s13  ;;  %p2196_p13 = scmp.lt.s32.totalorder %s2190_s13, %s2190_s13 }
  0x1e   :  { %p2197_p0 = por %p2196_p13, %p2195_p12 }
  0x20   :  { %p2198_p1 = pnand %p2197_p0, %p2191_p11 }
  0x22   :  { %2201 = shalt.err (!%p2198_p1)
}
  0x23   :  { %s2302_s1 = smov 256   ;;  %s2303_s10 = smov 16  }
  0x24   :  { %73 = dma.hbm_to_vmem [thread:$0]  %s2887_s7, 1024, %s2363_s12, [#allocation9], %s2302_s1, %s2302_s1, %s2303_s10  }
  0x25   :  { %s2304_s16 = smov [#allocation2]   ;;  %s2305_s18 = smov [#allocation7]  }
  0x26   :  { %s23_s17 = sshll.u32 %s2304_s16, 4  ;;  %s47_s19 = sshll.u32 %s2305_s18, 4  ;;  %s24_s17 = int_to_ptr.vmem [resolvable:$true] %s23_s17  ;;  %s2400_s19 = int_to_ptr.vmem [resolvable:$true] %s47_s19 }
  0x27   :  { %s2202_s24 = scalar_lea.hbm %s2880_s0, 512 }
  0x28   :  { %p2203_p2 = scmp.ne.s32.totalorder %s2880_s0, %s2202_s24  ;;  %p2206_p3 = scmp.lt.u32.totalorder %s2202_s24, %s2880_s0 }
  0x2a   :  { %p2208_p4 = pnand %p2206_p3, %p2203_p2 }
  0x2c   :  { %2211 = shalt.err (!%p2208_p4)
}
  0x2d   :  { %s2212_s7 = scalar_lea.vmem %s24_s17, 512  ;;  %p2217_p6 = scmp.lt.s32.totalorder %s24_s17, %s24_s17 }
  0x2e   :  { %p2213_p5 = scmp.ne.s32.totalorder %s24_s17, %s2212_s7  ;;  %p2218_p7 = scmp.lt.s32.totalorder %s2212_s7, %s2212_s7 }
  0x30   :  { %p2219_p8 = por %p2218_p7, %p2217_p6 }
  0x32   :  { %p2220_p9 = pnand %p2219_p8, %p2213_p5 }
  0x34   :  { %2223 = shalt.err (!%p2220_p9)
}
  0x35   :  { %29 = dma.hbm_to_vmem [thread:$0]  %s2880_s0, 512, %s24_s17, [#allocation3], %s2300_s21, %s2300_s21, %s2301_s22  }
  0x36   :  { %s2224_s13 = scalar_lea.hbm %s2882_s2, 12288 }
  0x37   :  { %p2225_p10 = scmp.ne.s32.totalorder %s2882_s2, %s2224_s13  ;;  %p2228_p11 = scmp.lt.u32.totalorder %s2224_s13, %s2882_s2 }
  0x39   :  { %p2230_p12 = pnand %p2228_p11, %p2225_p10 }
  0x3b   :  { %2233 = shalt.err (!%p2230_p12)
}
  0x3c   :  { %s2234_s20 = scalar_lea.vmem %s2400_s19, 12288  ;;  %p2239_p0 = scmp.lt.s32.totalorder %s2400_s19, %s2400_s19 }
  0x3d   :  { %p2235_p13 = scmp.ne.s32.totalorder %s2400_s19, %s2234_s20  ;;  %p2240_p1 = scmp.lt.s32.totalorder %s2234_s20, %s2234_s20 }
  0x3f   :  { %p2241_p2 = por %p2240_p1, %p2239_p0 }
  0x41   :  { %p2242_p3 = pnand %p2241_p2, %p2235_p13 }
  0x43   :  { %2245 = shalt.err (!%p2242_p3)
}
  0x44   :  { %53 = dma.hbm_to_vmem [thread:$0]  %s2882_s2, 12288, %s2400_s19, [#allocation6], %s2300_s21, %s2300_s21, %s2301_s22  }
  0x45   :  { %s2306_s23 = smov [#allocation10]   ;;  %s2246_s27 = scalar_lea.hbm %s2888_s8, 1024 }
  0x46   :  { %s79_s24 = sshll.u32 %s2306_s23, 4  ;;  %p2247_p4 = scmp.ne.s32.totalorder %s2888_s8, %s2246_s27  ;;  %s80_s24 = int_to_ptr.vmem [resolvable:$true] %s79_s24 }
  0x47   :  { %p2250_p5 = scmp.lt.u32.totalorder %s2246_s27, %s2888_s8 }
  0x49   :  { %p2252_p6 = pnand %p2250_p5, %p2247_p4 }
  0x4b   :  { %2255 = shalt.err (!%p2252_p6)
}
  0x4c   :  { %s2256_s30 = scalar_lea.vmem %s80_s24, 1024  ;;  %p2261_p8 = scmp.lt.s32.totalorder %s80_s24, %s80_s24 }
  0x4d   :  { %p2257_p7 = scmp.ne.s32.totalorder %s80_s24, %s2256_s30  ;;  %p2262_p9 = scmp.lt.s32.totalorder %s2256_s30, %s2256_s30 }
  0x4f   :  { %p2263_p10 = por %p2262_p9, %p2261_p8 }
  0x51   :  { %p2264_p11 = pnand %p2263_p10, %p2257_p7 }
  0x53   :  { %2267 = shalt.err (!%p2264_p11)
}
  0x54   :  { %85 = dma.hbm_to_vmem [thread:$0]  %s2888_s8, 1024, %s80_s24, [#allocation9], %s2302_s1, %s2302_s1, %s2303_s10  }
  0x55   :  { %2290 = dma.done.wait [#allocation3], 512  }
  0x56   :  { %2291 = vsyncadd [#allocation3], 4294966784 }
  0x57   :  { %2292 = dma.done.wait [#allocation6], 15360  }
  0x58   :  { %2293 = vsyncadd [#allocation6], 4294951936 }
  0x59   :  { %2294 = dma.done.wait [#allocation9], 2048  }
  0x5a   :  { %2295 = vsyncadd [#allocation9], 4294965248  ;;  %v2307_v0 = vmov 0   ;;  %v1974_v1 = vld [vmem:[#allocation5 + $0x44] ss:$8 sps:$4 sm:$0xff]   ;;  %v106_v11 = vlaneseq  ;;  %vm237_vm0 = vcmask 523264  }
  0x5b   :  { %276 = vmatprep.mubr.bf16.mxu0 %v2307_v0  ;;  %v1976_v2 = vld [vmem:[#allocation5 + $0x40] ss:$8 sps:$4 sm:$0xff]   ;;  %244 = vmatprep.subr.bf16.mxu0 %v1974_v1  ;;  %v1977_v3 = vld [vmem:[#allocation5 + $0x54] ss:$8 sps:$4 sm:$0xff]   ;;  %v1979_v4 = vld [vmem:[#allocation5 + $0x50] ss:$8 sps:$4 sm:$0xff]  }
  0x5c   :  { %245 = vmatpush1.bf16.msra.mxu0 %v1976_v2  ;;  %v1980_v5 = vld [vmem:[#allocation5 + $0x64] ss:$8 sps:$4 sm:$0xff]   ;;  %v1982_v6 = vld [vmem:[#allocation5 + $0x60] ss:$8 sps:$4 sm:$0xff]   ;;  %v1983_v7 = vld [vmem:[#allocation5 + $0x74] ss:$8 sps:$4 sm:$0xff]  }
  0x5d   :  { %246 = vmatprep.subr.bf16.mxu0 %v1977_v3  ;;  %v1985_v8 = vld [vmem:[#allocation5 + $0x70] ss:$8 sps:$4 sm:$0xff]   ;;  %v2453_v9 = vld [vmem:[#allocation2] sm:$0xff]  ;;  %v2455_v10 = vld [vmem:[#allocation2 + $0x8] sm:$0xff]  ;;  %v2460_v15 = vshrl.u32 %v106_v11, 7  ;;  %s2308_s8 = smov 32  }
  0x5e   :  { %v1988_v12 = vld [vmem:[#allocation5 + $0x4] ss:$8 sps:$4 sm:$0xff]   ;;  %v186_v13 = vpack.c.bf16 %v2455_v10, %v2453_v9  ;;  %v1986_v14 = vld [vmem:[#allocation5] ss:$8 sps:$4 sm:$0xff]   ;;  %v1991_v16 = vld [vmem:[#allocation5 + $0x14] ss:$8 sps:$4 sm:$0xff]  }
  0x5f   :  { %v1989_v17 = vld [vmem:[#allocation5 + $0x10] ss:$8 sps:$4 sm:$0xff]   ;;  %v1994_v20 = vld [vmem:[#allocation5 + $0x24] ss:$8 sps:$4 sm:$0xff]   ;;  %v159_v21 = vrot.slane %v2453_v9, 7  ;;  %v115_v22 = vand.u32 15, %v2460_v15 }
  0x60   :  { %247 = vmatpush1.bf16.msra.mxu0 %v1979_v4  ;;  %v2462_v18 = vld [vmem:[#allocation2 + $0x10] sm:$0xff]  ;;  %v2464_v19 = vld [vmem:[#allocation2 + $0x18] sm:$0xff]  ;;  %vm163_vm1 = vcmp.lt.s32.totalorder %v2460_v15, 1  ;;  %v1992_v24 = vld [vmem:[#allocation5 + $0x20] ss:$8 sps:$4 sm:$0xff]   ;;  %v160_v27 = vrot.slane %v2455_v10, 7 }
  0x61   :  { %248 = vmatprep.subr.bf16.mxu0 %v1980_v5  ;;  %v162_v23 = vrot.slane %v2464_v19, 7  ;;  %v187_v25 = vpack.c.bf16 %v2464_v19, %v2462_v18  ;;  %v1997_v26 = vld [vmem:[#allocation5 + $0x34] ss:$8 sps:$4 sm:$0xff]   ;;  %vm2477_vm2 = vcmp.ge.s32.totalorder %v115_v22, 1  ;;  %v109_v30 = vadd.s32 16, %v2460_v15  ;;  %s2309_s22 = smov 64  }
  0x62   :  { %v1995_v31 = vld [vmem:[#allocation5 + $0x30] ss:$8 sps:$4 sm:$0xff]   ;;  %v2000_v32 = vld [vmem:[#allocation5 + $0x84] ss:$8 sps:$4 sm:$0xff]   ;;  %v166_v33 = vsel %vm163_vm1, %v159_v21, %v160_v27  ;;  %v161_v35 = vrot.slane %v2462_v18, 7  ;;  %v108_v40 = vadd.s32 8, %v2460_v15 }
  0x63   :  { %v167_v28 = vsel %vm163_vm1, %v162_v23, %v159_v21  ;;  %v129_v36 = vand.u32 15, %v109_v30  ;;  %v1998_v37 = vld [vmem:[#allocation5 + $0x80] ss:$8 sps:$4 sm:$0xff]   ;;  %v2003_v39 = vld [vmem:[#allocation5 + $0x94] ss:$8 sps:$4 sm:$0xff]   ;;  %v397_v47 = vrot.slane %v2455_v10, 1 }
  0x64   :  { %249 = vmatpush1.bf16.msra.mxu0 %v1982_v6  ;;  %v172_v34 = vsel %vm2477_vm2, %v167_v28, 0.0  ;;  %v165_v41 = vsel %vm163_vm1, %v160_v27, %v161_v35  ;;  %v2001_v43 = vld [vmem:[#allocation5 + $0x90] ss:$8 sps:$4 sm:$0xff]   ;;  %v2006_v44 = vld [vmem:[#allocation5 + $0xa4] ss:$8 sps:$4 sm:$0xff]   ;;  %v164_v45 = vsel %vm163_vm1, %v161_v35, %v162_v23  ;;  %v122_v48 = vand.u32 15, %v108_v40 }
  0x65   :  { %250 = vmatprep.subr.bf16.mxu0 %v1983_v7  ;;  %v176_v38 = vpack.c.bf16 %v166_v33, %v172_v34  ;;  %vm2492_vm3 = vcmp.ge.s32.totalorder %v129_v36, 1  ;;  %v398_v49 = vrot.slane %v2462_v18, 1  ;;  %vm400_vm4 = vcmp.lt.s32.totalorder %v2460_v15, 7  ;;  %v2004_v50 = vld [vmem:[#allocation5 + $0xa0] ss:$8 sps:$4 sm:$0xff]  }
  0x66   :  { %v174_v46 = vsel %vm2492_vm3, %v165_v41, 0.0  ;;  %v2009_v52 = vld [vmem:[#allocation5 + $0xb4] ss:$8 sps:$4 sm:$0xff]   ;;  %v396_v53 = vrot.slane %v2453_v9, 1  ;;  %vm2508_vm5 = vcmp.lt.s32.totalorder %v122_v48, 15  ;;  %v110_v56 = vadd.s32 24, %v2460_v15 }
  0x67   :  { %v177_v51 = vpack.c.bf16 %v164_v45, %v174_v46  ;;  %v402_v54 = vsel %vm400_vm4, %v397_v47, %v398_v49  ;;  %v2007_v57 = vld [vmem:[#allocation5 + $0xb0] ss:$8 sps:$4 sm:$0xff]   ;;  %v399_v60 = vrot.slane %v2464_v19, 1  ;;  %vm2311_vm10 = vmmov 1  }
  0x68   :  { %251 = vmatpush1.bf16.msra.mxu0 %v1985_v8  ;;  %v403_v58 = vsel %vm400_vm4, %v396_v53, %v397_v47  ;;  %v410_v59 = vsel %vm2508_vm5, %v402_v54, 0.0  ;;  %v136_v61 = vand.u32 15, %v110_v56  ;;  %vm2678_vm11 = vmpackc.low %vm2311_vm10, %vm2477_vm2  ;;  %v2121_v55 = vld [vmem:[#allocation7 + $0x250] ss:$8 sps:$4 sm:$0xff]  }
  0x69   :  { %343 = vmatprep.subr.bf16.mxu0 %v1988_v12  ;;  %v413_v62 = vpack.c.bf16 %v410_v59, %v403_v58  ;;  %v404_v63 = vsel %vm400_vm4, %v399_v60, %v396_v53  ;;  %v401_v2 = vsel %vm400_vm4, %v398_v49, %v399_v60  ;;  %vm2693_vm12 = vmpackc.low %vm2311_vm10, %vm2492_vm3 }
  0x6a   :  { %vm2522_vm6 = vcmp.lt.s32.totalorder %v136_v61, 15  ;;  %v2578_v61 = vand.u32 127, %v106_v11  ;;  %v2016_v11 = vld [vmem:[#allocation7 + $0x110] ss:$8 sps:$4 sm:$0xff]   ;;  %vm2745_vm13 = vmpackc.low %vm2508_vm5, %vm2311_vm10 }
  0x6b   :  { %1785 = vmatmul.mubr.msk.bf16.vlgmr.msra.gmra.mrb[0].mxu0 %vm237_vm0, %v186_v13  ;;  %v412_v3 = vsel %vm2522_vm6, %v404_v63, 0.0  ;;  %vm1921_vm14 = vmpackc.low %vm2522_vm6, %vm2311_vm10 }
  0x6c   :  { %344 = vmatpush1.bf16.msra.mxu0 %v1986_v14  ;;  %286 = vmatprep.mubr.bf16.mxu0 %v2307_v0  ;;  %v414_v4 = vpack.c.bf16 %v412_v3, %v401_v2  ;;  %vm555_vm7 = vcmp.lt.s32.totalorder %v2578_v61, 16  ;;  %v2010_v2 = vld [vmem:[#allocation7 + $0x100] ss:$8 sps:$4 sm:$0xff]   ;;  %v2012_v3 = vld [vmem:[#allocation7 + $0x104] ss:$8 sps:$4 sm:$0xff]   ;;  %vm564_vm8 = vcmp.lt.s32.totalorder %v2578_v61, 32 }
  0x6d   :  { %345 = vmatprep.subr.bf16.mxu0 %v1991_v16  ;;  %vm573_vm9 = vcmp.lt.s32.totalorder %v2578_v61, 64 }
  0x70   :  { %346 = vmatpush1.bf16.msra.mxu0 %v1989_v17 }
  0x71   :  { %347 = vmatprep.subr.bf16.mxu0 %v1994_v20 }
  0x73   :  { %1786 = vmatmul.mubr.msk.bf16.gmra.mrb[4].mxu0 %vm237_vm0, %v187_v25 }
  0x74   :  { %348 = vmatpush1.bf16.msra.mxu0 %v1992_v24  ;;  %375 = vmatprep.mubr.bf16.mxu0 %v2307_v0 }
  0x75   :  { %349 = vmatprep.subr.bf16.mxu0 %v1997_v26 }
  0x78   :  { %350 = vmatpush1.bf16.msra.mxu0 %v1995_v31 }
  0x79   :  { %470 = vmatprep.subr.bf16.mxu0 %v2000_v32 }
  0x7b   :  { %1795 = vmatmul.mubr.msk.bf16.vlgmr.msra.gmra.mrb[0].mxu0 %vm237_vm0, %v176_v38 }
  0x7c   :  { %471 = vmatpush1.bf16.msra.mxu0 %v1998_v37  ;;  %385 = vmatprep.mubr.bf16.mxu0 %v2307_v0 }
  0x7d   :  { %472 = vmatprep.subr.bf16.mxu0 %v2003_v39 }
  0x80   :  { %473 = vmatpush1.bf16.msra.mxu0 %v2001_v43 }
  0x81   :  { %474 = vmatprep.subr.bf16.mxu0 %v2006_v44 }
  0x83   :  { %1796 = vmatmul.mubr.msk.bf16.gmra.mrb[4].mxu0 %vm237_vm0, %v177_v51 }
  0x84   :  { %475 = vmatpush1.bf16.msra.mxu0 %v2004_v50  ;;  %502 = vmatprep.mubr.bf16.mxu0 %v2307_v0 }
  0x85   :  { %476 = vmatprep.subr.bf16.mxu0 %v2009_v52 }
  0x88   :  { %477 = vmatpush1.bf16.msra.mxu0 %v2007_v57 }
  0x89   :  { %998 = vmatprep.subr.bf16.mxu0 %v2012_v3  ;;  %v2052_v3 = vld [vmem:[#allocation7 + $0x170] ss:$8 sps:$4 sm:$0xff]  }
  0x8b   :  { %1805 = vmatmul.mubr.msk.bf16.vlgmr.msra.gmra.mrb[0].mxu0 %vm237_vm0, %v413_v62 }
  0x8c   :  { %512 = vmatprep.mubr.bf16.mxu0 %v2307_v0  ;;  %999 = vmatpush1.bf16.msra.mxu0 %v2010_v2  ;;  %v2054_v2 = vld [vmem:[#allocation7 + $0x174] ss:$8 sps:$4 sm:$0xff]  }
  0x93   :  { %1806 = vmatmul.mubr.msk.bf16.gmra.mrb[4].mxu0 %vm237_vm0, %v414_v4  ;;  %v2013_v4 = vld [vmem:[#allocation7 + $0x4] ss:$8 sps:$4 sm:$0xff]  }
  0x94   :  { %1211 = vmatprep.subr.bf16.mxu1 %v2013_v4  ;;  %v2055_v4 = vld [vmem:[#allocation7 + $0x74] ss:$8 sps:$4 sm:$0xff]  }
 0x15e   :  { %v2533_v5 = vpop.f32.mrb[0].mxu0 }
 0x15f   :  { %v2535_v6 = vpop.f32.mrb[1].mxu0  ;;  %v579_v8 = vmul.f32 %v2533_v5, %v2533_v5 }
 0x160   :  { %v2537_v7 = vpop.f32.mrb[2].mxu0  ;;  %v580_v12 = vmul.f32 %v2535_v6, %v2535_v6 }
 0x161   :  { %v531_v0 = vadd.f32 %v2537_v7, %v2533_v5  ;;  %v581_v9 = vmul.f32 %v2537_v7, %v2537_v7  ;;  %v2545_v10 = vpop.f32.mrb[3].mxu0 }
 0x162   :  { %v540_v13 = vadd.f32 %v2545_v10, %v2535_v6  ;;  %v582_v14 = vmul.f32 %v2545_v10, %v2545_v10 }
 0x163   :  { %v587_v16 = vadd.f32 %v581_v9, %v579_v8  ;;  %v2015_v8 = vld [vmem:[#allocation7] ss:$8 sps:$4 sm:$0xff]  }
 0x164   :  { %v596_v17 = vadd.f32 %v582_v14, %v580_v12  ;;  %1212 = vmatpush1.bf16.msra.mxu1 %v2015_v8  ;;  %v2057_v8 = vld [vmem:[#allocation7 + $0x70] ss:$8 sps:$4 sm:$0xff]  }
 0x166   :  { %v2553_v18 = vpop.f32.mrb[4].mxu0 }
 0x167   :  { %v532_v19 = vadd.f32 %v531_v0, %v2553_v18  ;;  %v583_v20 = vmul.f32 %v2553_v18, %v2553_v18  ;;  %v2558_v21 = vpop.f32.mrb[5].mxu0  ;;  %v2018_v0 = vld [vmem:[#allocation7 + $0x114] ss:$8 sps:$4 sm:$0xff]  }
 0x168   :  { %v541_v22 = vadd.f32 %v540_v13, %v2558_v21  ;;  %v584_v23 = vmul.f32 %v2558_v21, %v2558_v21  ;;  %v2563_v24 = vpop.f32.mrb[6].mxu0  ;;  %1000 = vmatprep.subr.bf16.mxu0 %v2018_v0  ;;  %v2060_v0 = vld [vmem:[#allocation7 + $0x184] ss:$8 sps:$4 sm:$0xff]  }
 0x169   :  { %v588_v25 = vadd.f32 %v587_v16, %v583_v20  ;;  %v533_v26 = vadd.f32 %v532_v19, %v2563_v24  ;;  %v585_v27 = vmul.f32 %v2563_v24, %v2563_v24  ;;  %v2568_v28 = vpop.f32.mrb[7].mxu0  ;;  %1001 = vmatpush1.bf16.msra.mxu0 %v2016_v11  ;;  %v2066_v11 = vld [vmem:[#allocation7 + $0x194] ss:$8 sps:$4 sm:$0xff]  }
 0x16a   :  { %v597_v30 = vadd.f32 %v596_v17, %v584_v23  ;;  %v542_v31 = vadd.f32 %v541_v22, %v2568_v28  ;;  %v586_v32 = vmul.f32 %v2568_v28, %v2568_v28 }
 0x16b   :  { %v534_v33 = vrot.slane %v533_v26, 4  ;;  %v589_v34 = vadd.f32 %v588_v25, %v585_v27  ;;  %v2019_v25 = vld [vmem:[#allocation7 + $0x14] ss:$8 sps:$4 sm:$0xff]   ;;  %v2024_v27 = vld [vmem:[#allocation7 + $0x124] ss:$8 sps:$4 sm:$0xff]  }
 0x16c   :  { %v543_v35 = vrot.slane %v542_v31, 4  ;;  %v598_v36 = vadd.f32 %v597_v30, %v586_v32  ;;  %1213 = vmatprep.subr.bf16.mxu1 %v2019_v25  ;;  %v2022_v30 = vld [vmem:[#allocation7 + $0x120] ss:$8 sps:$4 sm:$0xff]   ;;  %1002 = vmatprep.subr.bf16.mxu0 %v2024_v27  ;;  %v2076_v25 = vld [vmem:[#allocation7 + $0x1b0] ss:$8 sps:$4 sm:$0xff]  }
 0x16d   :  { %v535_v37 = vadd.f32 %v534_v33, %v533_v26  ;;  %v590_v38 = vrot.slane %v589_v34, 4  ;;  %v2021_v26 = vld [vmem:[#allocation7 + $0x10] ss:$8 sps:$4 sm:$0xff]   ;;  %1003 = vmatpush1.bf16.msra.mxu0 %v2022_v30  ;;  %v2027_v32 = vld [vmem:[#allocation7 + $0x20] ss:$8 sps:$4 sm:$0xff]  }
 0x16e   :  { %v544_v39 = vadd.f32 %v543_v35, %v542_v31  ;;  %v599_v40 = vrot.slane %v598_v36, 4  ;;  %1214 = vmatpush1.bf16.msra.mxu1 %v2021_v26  ;;  %v2025_v31 = vld [vmem:[#allocation7 + $0x24] ss:$8 sps:$4 sm:$0xff]   ;;  %v2030_v33 = vld [vmem:[#allocation7 + $0x134] ss:$8 sps:$4 sm:$0xff]  }
 0x16f   :  { %v536_v41 = vrot.slane %v535_v37, 2  ;;  %v591_v43 = vadd.f32 %v590_v38, %v589_v34  ;;  %1215 = vmatprep.subr.bf16.mxu1 %v2025_v31  ;;  %v2028_v34 = vld [vmem:[#allocation7 + $0x130] ss:$8 sps:$4 sm:$0xff]   ;;  %1004 = vmatprep.subr.bf16.mxu0 %v2030_v33  ;;  %v2031_v35 = vld [vmem:[#allocation7 + $0x34] ss:$8 sps:$4 sm:$0xff]  }
 0x170   :  { %v545_v44 = vrot.slane %v544_v39, 2  ;;  %v600_v45 = vadd.f32 %v599_v40, %v598_v36  ;;  %v2033_v36 = vld [vmem:[#allocation7 + $0x30] ss:$8 sps:$4 sm:$0xff]   ;;  %v2078_v26 = vld [vmem:[#allocation7 + $0x1b4] ss:$8 sps:$4 sm:$0xff]  }
 0x171   :  { %v537_v46 = vadd.f32 %v536_v41, %v535_v37  ;;  %v592_v47 = vrot.slane %v591_v43, 2  ;;  %1005 = vmatpush1.bf16.msra.mxu0 %v2028_v34  ;;  %v2079_v27 = vld [vmem:[#allocation7 + $0xb4] ss:$8 sps:$4 sm:$0xff]   ;;  %v2084_v30 = vld [vmem:[#allocation7 + $0x1c4] ss:$8 sps:$4 sm:$0xff]  }
 0x172   :  { %v546_v48 = vadd.f32 %v545_v44, %v544_v39  ;;  %v601_v49 = vrot.slane %v600_v45, 2  ;;  %1216 = vmatpush1.bf16.msra.mxu1 %v2027_v32  ;;  %v2036_v39 = vld [vmem:[#allocation7 + $0x144] ss:$8 sps:$4 sm:$0xff]   ;;  %v2081_v31 = vld [vmem:[#allocation7 + $0xb0] ss:$8 sps:$4 sm:$0xff]  }
 0x173   :  { %v538_v50 = vrot.slane %v537_v46, 1  ;;  %v593_v51 = vadd.f32 %v592_v47, %v591_v43  ;;  %1217 = vmatprep.subr.bf16.mxu1 %v2031_v35  ;;  %v2034_v43 = vld [vmem:[#allocation7 + $0x140] ss:$8 sps:$4 sm:$0xff]   ;;  %1006 = vmatprep.subr.bf16.mxu0 %v2036_v39  ;;  %v2085_v33 = vld [vmem:[#allocation7 + $0xc4] ss:$8 sps:$4 sm:$0xff]  }
 0x174   :  { %v602_v52 = vadd.f32 %v601_v49, %v600_v45  ;;  %v547_v56 = vrot.slane %v546_v48, 1  ;;  %v2039_v47 = vld [vmem:[#allocation7 + $0x40] ss:$8 sps:$4 sm:$0xff]   ;;  %v2090_v34 = vld [vmem:[#allocation7 + $0x1d4] ss:$8 sps:$4 sm:$0xff]  }
 0x175   :  { %v539_v53 = vadd.f32 %v538_v50, %v537_v46  ;;  %v594_v54 = vrot.slane %v593_v51, 1  ;;  %v2037_v46 = vld [vmem:[#allocation7 + $0x44] ss:$8 sps:$4 sm:$0xff]   ;;  %1007 = vmatpush1.bf16.msra.mxu0 %v2034_v43  ;;  %v2042_v50 = vld [vmem:[#allocation7 + $0x154] ss:$8 sps:$4 sm:$0xff]  }
 0x176   :  { %v603_v58 = vrot.slane %v602_v52, 1  ;;  %v548_v59 = vadd.f32 %v547_v56, %v546_v48  ;;  %1218 = vmatpush1.bf16.msra.mxu1 %v2033_v36  ;;  %1008 = vmatprep.subr.bf16.mxu0 %v2042_v50  ;;  %v2082_v32 = vld [vmem:[#allocation7 + $0x1c0] ss:$8 sps:$4 sm:$0xff]   ;;  %v2088_v36 = vld [vmem:[#allocation7 + $0x1d0] ss:$8 sps:$4 sm:$0xff]  }
 0x177   :  { %549 = vrot.lane.b32.xlu0 %v539_v53, %s2303_s10  ;;  %v595_v57 = vadd.f32 %v594_v54, %v593_v51  ;;  %1219 = vmatprep.subr.bf16.mxu1 %v2037_v46  ;;  %v2087_v35 = vld [vmem:[#allocation7 + $0xc0] ss:$8 sps:$4 sm:$0xff]   ;;  %v2093_v39 = vld [vmem:[#allocation7 + $0xd0] ss:$8 sps:$4 sm:$0xff]   ;;  %v2102_v43 = vld [vmem:[#allocation7 + $0x1f4] ss:$8 sps:$4 sm:$0xff]  }
 0x178   :  { %v604_v60 = vadd.f32 %v603_v58, %v602_v52  ;;  %v2045_v58 = vld [vmem:[#allocation7 + $0x50] ss:$8 sps:$4 sm:$0xff]   ;;  %v2099_v46 = vld [vmem:[#allocation7 + $0xe0] ss:$8 sps:$4 sm:$0xff]   ;;  %v2108_v50 = vld [vmem:[#allocation7 + $0x204] ss:$8 sps:$4 sm:$0xff]  }
 0x179   :  { %605 = vrot.lane.b32.xlu1 %v595_v57, %s2303_s10 }
 0x17a   :  { %1220 = vmatpush1.bf16.msra.mxu1 %v2039_v47  ;;  %v2100_v47 = vld [vmem:[#allocation7 + $0x1f0] ss:$8 sps:$4 sm:$0xff]  }
 0x17b   :  { %551 = vrot.lane.b32.xlu0 %v548_v59, %s2303_s10 }
 0x17d   :  { %607 = vrot.lane.b32.xlu1 %v604_v60, %s2303_s10 }
 0x1e9   :  { %v550_v62 = vpop.permute.xlu0 %549 }
 0x1eb   :  { %v606_v63 = vpop.permute.xlu1 %605 }
 0x1ed   :  { %v552_v9 = vpop.permute.xlu0 %551 }
 0x1ee   :  { %v556_v12 = vsel %vm555_vm7, %v550_v62, %v552_v9  ;;  %v557_v13 = vsel %vm555_vm7, %v552_v9, %v550_v62  ;;  %v2049_v62 = vld [vmem:[#allocation7 + $0x64] ss:$8 sps:$4 sm:$0xff]   ;;  %v2058_v9 = vld [vmem:[#allocation7 + $0x180] ss:$8 sps:$4 sm:$0xff]  }
 0x1ef   :  { %v558_v14 = vadd.f32 %v557_v13, %v539_v53  ;;  %v559_v16 = vadd.f32 %v556_v12, %v548_v59  ;;  %v608_v17 = vpop.permute.xlu1 %607  ;;  %v2040_v53 = vld [vmem:[#allocation7 + $0x150] ss:$8 sps:$4 sm:$0xff]   ;;  %v2048_v59 = vld [vmem:[#allocation7 + $0x164] ss:$8 sps:$4 sm:$0xff]   ;;  %v2063_v13 = vld [vmem:[#allocation7 + $0x80] ss:$8 sps:$4 sm:$0xff]  }
 0x1f0   :  { %v609_v19 = vsel %vm555_vm7, %v606_v63, %v608_v17  ;;  %v610_v20 = vsel %vm555_vm7, %v608_v17, %v606_v63  ;;  %1009 = vmatpush1.bf16.msra.mxu0 %v2040_v53  ;;  %v2051_v63 = vld [vmem:[#allocation7 + $0x60] ss:$8 sps:$4 sm:$0xff]   ;;  %v2061_v12 = vld [vmem:[#allocation7 + $0x84] ss:$8 sps:$4 sm:$0xff]   ;;  %v2069_v17 = vld [vmem:[#allocation7 + $0x90] ss:$8 sps:$4 sm:$0xff]  }
 0x1f1   :  { %560 = vrot.lane.b32.xlu0 %v558_v14, %s2308_s8  ;;  %562 = vrot.lane.b32.xlu1 %v559_v16, %s2308_s8  ;;  %v611_v22 = vadd.f32 %v610_v20, %v595_v57  ;;  %v612_v23 = vadd.f32 %v609_v19, %v604_v60  ;;  %v2043_v57 = vld [vmem:[#allocation7 + $0x54] ss:$8 sps:$4 sm:$0xff]   ;;  %v2046_v60 = vld [vmem:[#allocation7 + $0x160] ss:$8 sps:$4 sm:$0xff]   ;;  %v2072_v19 = vld [vmem:[#allocation7 + $0x1a4] ss:$8 sps:$4 sm:$0xff]  }
 0x1f2   :  { %1221 = vmatprep.subr.bf16.mxu1 %v2043_v57  ;;  %1010 = vmatprep.subr.bf16.mxu0 %v2048_v59  ;;  %v2070_v20 = vld [vmem:[#allocation7 + $0x1a0] ss:$8 sps:$4 sm:$0xff]  }
 0x1f3   :  { %1222 = vmatpush1.bf16.msra.mxu1 %v2045_v58 }
 0x1f4   :  { %1011 = vmatpush1.bf16.msra.mxu0 %v2046_v60  ;;  %1223 = vmatprep.subr.bf16.mxu1 %v2049_v62 }
 0x1f5   :  { %613 = vrot.lane.b32.xlu0 %v611_v22, %s2308_s8  ;;  %615 = vrot.lane.b32.xlu1 %v612_v23, %s2308_s8 }
 0x1f6   :  { %1012 = vmatprep.subr.bf16.mxu0 %v2054_v2 }
 0x1f7   :  { %1224 = vmatpush1.bf16.msra.mxu1 %v2051_v63 }
 0x1f8   :  { %1013 = vmatpush1.bf16.msra.mxu0 %v2052_v3  ;;  %1225 = vmatprep.subr.bf16.mxu1 %v2055_v4 }
 0x1f9   :  { %1014 = vmatprep.subr.bf16.mxu0 %v2060_v0 }
 0x1fb   :  { %1226 = vmatpush1.bf16.msra.mxu1 %v2057_v8 }
 0x1fc   :  { %1015 = vmatpush1.bf16.msra.mxu0 %v2058_v9  ;;  %1227 = vmatprep.subr.bf16.mxu1 %v2061_v12 }
 0x1fd   :  { %1016 = vmatprep.subr.bf16.mxu0 %v2066_v11 }
 0x1ff   :  { %1228 = vmatpush1.bf16.msra.mxu1 %v2063_v13 }
 0x263   :  { %v561_v37 = vpop.permute.xlu0 %560  ;;  %v563_v38 = vpop.permute.xlu1 %562 }
 0x264   :  { %v565_v40 = vsel %vm564_vm8, %v561_v37, %v563_v38  ;;  %v566_v41 = vsel %vm564_vm8, %v563_v38, %v561_v37  ;;  %v2091_v37 = vld [vmem:[#allocation7 + $0xd4] ss:$8 sps:$4 sm:$0xff]   ;;  %v2096_v38 = vld [vmem:[#allocation7 + $0x1e4] ss:$8 sps:$4 sm:$0xff]  }
 0x265   :  { %v2598_v44 = vadd.f32 %v566_v41, %v558_v14  ;;  %v2600_v45 = vadd.f32 %v565_v40, %v559_v16  ;;  %v2064_v14 = vld [vmem:[#allocation7 + $0x190] ss:$8 sps:$4 sm:$0xff]   ;;  %v2067_v16 = vld [vmem:[#allocation7 + $0x94] ss:$8 sps:$4 sm:$0xff]   ;;  %v2094_v40 = vld [vmem:[#allocation7 + $0x1e0] ss:$8 sps:$4 sm:$0xff]  }
 0x266   :  { %1017 = vmatpush1.bf16.msra.mxu0 %v2064_v14  ;;  %1229 = vmatprep.subr.bf16.mxu1 %v2067_v16  ;;  %v2097_v41 = vld [vmem:[#allocation7 + $0xe4] ss:$8 sps:$4 sm:$0xff]   ;;  %v2310_v14 = vmov 1966171168  }
 0x267   :  { %v614_v48 = vpop.permute.xlu0 %613  ;;  %569 = vrot.lane.b32.xlu0 %v2598_v44, %s2309_s22  ;;  %571 = vrot.lane.b32.xlu1 %v2600_v45, %s2309_s22  ;;  %v616_v49 = vpop.permute.xlu1 %615  ;;  %v642_v16 = vunpack.c.l.s4 %v2310_v14 }
 0x268   :  { %v617_v51 = vsel %vm564_vm8, %v614_v48, %v616_v49  ;;  %v618_v52 = vsel %vm564_vm8, %v616_v49, %v614_v48  ;;  %1230 = vmatpush1.bf16.msra.mxu1 %v2069_v17  ;;  %1018 = vmatprep.subr.bf16.mxu0 %v2072_v19  ;;  %v2103_v48 = vld [vmem:[#allocation7 + $0xf4] ss:$8 sps:$4 sm:$0xff]   ;;  %v2105_v49 = vld [vmem:[#allocation7 + $0xf0] ss:$8 sps:$4 sm:$0xff]  }
 0x269   :  { %v2610_v54 = vadd.f32 %v618_v52, %v611_v22  ;;  %v2612_v56 = vadd.f32 %v617_v51, %v612_v23  ;;  %v2073_v22 = vld [vmem:[#allocation7 + $0xa4] ss:$8 sps:$4 sm:$0xff]   ;;  %v2075_v23 = vld [vmem:[#allocation7 + $0xa0] ss:$8 sps:$4 sm:$0xff]   ;;  %v643_v17 = vunpack.c.0.s8 %v642_v16 }
 0x26a   :  { %1019 = vmatpush1.bf16.msra.mxu0 %v2070_v20  ;;  %1231 = vmatprep.subr.bf16.mxu1 %v2073_v22 }
 0x26b   :  { %621 = vrot.lane.b32.xlu0 %v2610_v54, %s2309_s22  ;;  %623 = vrot.lane.b32.xlu1 %v2612_v56, %s2309_s22  ;;  %v2632_v19 = vsub.s32 %v643_v17, %v2460_v15 }
 0x26c   :  { %1020 = vmatprep.subr.bf16.mxu0 %v2078_v26  ;;  %1232 = vmatpush1.bf16.msra.mxu1 %v2075_v23 }
 0x26d   :  { %1233 = vmatprep.subr.bf16.mxu1 %v2079_v27 }
 0x26e   :  { %1021 = vmatpush1.bf16.msra.mxu0 %v2076_v25  ;;  %v2642_v25 = vsub.s32 1, %v2460_v15 }
 0x26f   :  { %1022 = vmatprep.subr.bf16.mxu0 %v2084_v30 }
 0x270   :  { %1234 = vmatpush1.bf16.msra.mxu1 %v2081_v31 }
 0x271   :  { %1235 = vmatprep.subr.bf16.mxu1 %v2085_v33 }
 0x272   :  { %1023 = vmatpush1.bf16.msra.mxu0 %v2082_v32 }
 0x273   :  { %1024 = vmatprep.subr.bf16.mxu0 %v2090_v34 }
 0x274   :  { %1236 = vmatpush1.bf16.msra.mxu1 %v2087_v35 }
 0x275   :  { %1237 = vmatprep.subr.bf16.mxu1 %v2091_v37 }
 0x276   :  { %1025 = vmatpush1.bf16.msra.mxu0 %v2088_v36  ;;  %v657_v36 = vld [vmem:[%s2884_s4] sm:$0x3] }
 0x277   :  { %1026 = vmatprep.subr.bf16.mxu0 %v2096_v38 }
 0x278   :  { %1238 = vmatpush1.bf16.msra.mxu1 %v2093_v39 }
 0x279   :  { %1239 = vmatprep.subr.bf16.mxu1 %v2097_v41 }
 0x27a   :  { %1027 = vmatpush1.bf16.msra.mxu0 %v2094_v40 }
 0x27b   :  { %1028 = vmatprep.subr.bf16.mxu0 %v2102_v43 }
 0x27c   :  { %1240 = vmatpush1.bf16.msra.mxu1 %v2099_v46 }
 0x27d   :  { %1241 = vmatprep.subr.bf16.mxu1 %v2103_v48 }
 0x27e   :  { %1029 = vmatpush1.bf16.msra.mxu0 %v2100_v47 }
 0x280   :  { %1242 = vmatpush1.bf16.msra.mxu1 %v2105_v49 }
 0x281   :  { %1485 = vmatprep.subr.bf16.mxu1 %v2108_v50 }
 0x2d9   :  { %v570_v51 = vpop.permute.xlu0 %569  ;;  %v572_v52 = vpop.permute.xlu1 %571 }
 0x2da   :  { %v574_v53 = vsel %vm573_vm9, %v570_v51, %v572_v52  ;;  %v575_v57 = vsel %vm573_vm9, %v572_v52, %v570_v51 }
 0x2db   :  { %v576_v58 = vadd.f32 %v575_v57, %v2598_v44  ;;  %v577_v59 = vadd.f32 %v574_v53, %v2600_v45  ;;  %v726_v53 = vld [vmem:[#allocation8 + $0x8] sm:$0xff] }
 0x2dd   :  { %v578_v60 = vadd.f32 %v577_v59, %v576_v58  ;;  %v622_v62 = vpop.permute.xlu0 %621  ;;  %v624_v63 = vpop.permute.xlu1 %623  ;;  %v725_v59 = vld [vmem:[#allocation8] sm:$0xff] }
 0x2de   :  { %v625_v2 = vsel %vm573_vm9, %v622_v62, %v624_v63  ;;  %v626_v3 = vsel %vm573_vm9, %v624_v63, %v622_v62  ;;  %v730_v63 = vld [vmem:[#allocation8 + $0x28] sm:$0xff] }
 0x2df   :  { %v631_v4 = vmul.f32 0.001953125, %v578_v60  ;;  %v627_v8 = vadd.f32 %v626_v3, %v2610_v54  ;;  %v628_v0 = vadd.f32 %v625_v2, %v2612_v56  ;;  %v636_v54 = vld [vmem:[%s2883_s3] sm:$0x3]  ;;  %v2639_v56 = vsub.s32 0, %v2460_v15  ;;  %v727_v60 = vld [vmem:[#allocation8 + $0x10] sm:$0xff] }
 0x2e0   :  { %v2115_v15 = vld [vmem:[#allocation7 + $0x230] ss:$8 sps:$4 sm:$0xff]  }
 0x2e1   :  { %v629_v9 = vadd.f32 %v628_v0, %v627_v8  ;;  %v633_v12 = vmul.f32 %v631_v4, %v631_v4  ;;  %v731_v8 = vld [vmem:[#allocation8 + $0x30] sm:$0xff] }
 0x2e3   :  { %v632_v13 = vmul.f32 0.001953125, %v629_v9 }
 0x2e5   :  { %v634_v44 = vsub.f32 %v632_v13, %v633_v12 }
 0x2e7   :  { %v635_v11 = vmax.f32 %v634_v44, 0.0 }
 0x2e9   :  { %v637_v45 = vadd.f32 1e-05, %v635_v11 }
 0x2eb   :  { %2154 = vrsqrt.f32 %v637_v45 }
 0x2f5   :  { %v2155_v20 = vpop.eup %2154 }
 0x2f6   :  { %v640_v22 = vcombine.low %v2155_v20, %v2155_v20 }
 0x2f8   :  { %v647_v23 = vrot.slane %v640_v22, %v2632_v19 }
 0x2fa   :  { %v654_v26 = vrot.slane %v647_v23, %v2632_v19 }
 0x2fc   :  { %v656_v27 = vmul.f32 %v654_v26, %v636_v54 }
 0x2fe   :  { %v662_v30 = vrot.slane %v656_v27, %v2639_v56  ;;  %v666_v31 = vrot.slane %v656_v27, %v2642_v25 }
 0x300   :  { %v669_v32 = vmul.f32 %v662_v30, %v631_v4  ;;  %v670_v33 = vmul.f32 %v666_v31, %v631_v4  ;;  %v691_v39 = vmul.f32 %v666_v31, %v2535_v6  ;;  %v693_v40 = vmul.f32 %v666_v31, %v2545_v10  ;;  %v728_v10 = vld [vmem:[#allocation8 + $0x18] sm:$0xff] }
 0x301   :  { %v690_v46 = vmul.f32 %v662_v30, %v2533_v5  ;;  %v692_v47 = vmul.f32 %v662_v30, %v2537_v7  ;;  %v695_v48 = vmul.f32 %v666_v31, %v2558_v21  ;;  %v697_v49 = vmul.f32 %v666_v31, %v2568_v28  ;;  %v732_v7 = vld [vmem:[#allocation8 + $0x38] sm:$0xff] }
 0x302   :  { %v673_v34 = vcombine.low %v669_v32, %v670_v33  ;;  %v696_v50 = vmul.f32 %v662_v30, %v2563_v24  ;;  %v694_v51 = vmul.f32 %v662_v30, %v2553_v18  ;;  %v729_v18 = vld [vmem:[#allocation8 + $0x20] sm:$0xff] }
 0x304   :  { %v680_v35 = vrot.slane %v673_v34, %v2632_v19 }
 0x306   :  { %v687_v37 = vrot.slane %v680_v35, %v2632_v19 }
 0x308   :  { %v689_v38 = vsub.f32 %v657_v36, %v687_v37 }
 0x30a   :  { %v702_v41 = vrot.slane %v689_v38, %v2639_v56  ;;  %v706_v43 = vrot.slane %v689_v38, %v2642_v25 }
 0x30c   :  { %v710_v52 = vadd.f32 %v706_v43, %v691_v39  ;;  %v712_v6 = vadd.f32 %v706_v43, %v693_v40  ;;  %v709_v57 = vadd.f32 %v702_v41, %v690_v46  ;;  %v711_v58 = vadd.f32 %v702_v41, %v692_v47  ;;  %v2106_v47 = vld [vmem:[#allocation7 + $0x200] ss:$8 sps:$4 sm:$0xff]   ;;  %v2145_v40 = vld [vmem:[#allocation7 + $0x2d0] ss:$8 sps:$4 sm:$0xff]  }
 0x30d   :  { %v714_v62 = vadd.f32 %v706_v43, %v695_v48  ;;  %v716_v5 = vadd.f32 %v706_v43, %v697_v49  ;;  %v715_v2 = vadd.f32 %v702_v41, %v696_v50  ;;  %v713_v21 = vadd.f32 %v702_v41, %v694_v51 }
 0x30e   :  { %v718_v3 = vmax.f32 %v710_v52, 0.0  ;;  %v720_v28 = vmax.f32 %v712_v6, 0.0  ;;  %v717_v4 = vmax.f32 %v709_v57, 0.0  ;;  %v719_v24 = vmax.f32 %v711_v58, 0.0  ;;  %v2111_v6 = vld [vmem:[#allocation7 + $0x214] ss:$8 sps:$4 sm:$0xff]  }
 0x30f   :  { %v722_v0 = vmax.f32 %v714_v62, 0.0  ;;  %v724_v9 = vmax.f32 %v716_v5, 0.0  ;;  %v723_v12 = vmax.f32 %v715_v2, 0.0  ;;  %v721_v13 = vmax.f32 %v713_v21, 0.0 }
 0x310   :  { %v2662_v44 = vadd.f32 %v726_v53, %v718_v3  ;;  %v736_v11 = vadd.f32 %v728_v10, %v720_v28  ;;  %v2664_v45 = vadd.f32 %v725_v59, %v717_v4  ;;  %v735_v14 = vadd.f32 %v727_v60, %v719_v24  ;;  %v2114_v4 = vld [vmem:[#allocation7 + $0x224] ss:$8 sps:$4 sm:$0xff]  }
 0x311   :  { %v738_v16 = vadd.f32 %v730_v63, %v722_v0  ;;  %v740_v17 = vadd.f32 %v732_v7, %v724_v9  ;;  %v739_v20 = vadd.f32 %v731_v8, %v723_v12  ;;  %v737_v22 = vadd.f32 %v729_v18, %v721_v13  ;;  %v2109_v7 = vld [vmem:[#allocation7 + $0x210] ss:$8 sps:$4 sm:$0xff]  }
 0x312   :  { %v802_v23 = vpack.c.bf16 %v736_v11, %v2662_v44  ;;  %v801_v54 = vpack.c.bf16 %v735_v14, %v2664_v45  ;;  %v1264_v26 = vrot.slane %v2664_v45, 1  ;;  %v1266_v27 = vrot.slane %v735_v14, 1 }
 0x313   :  { %v804_v30 = vpack.c.bf16 %v740_v17, %v738_v16  ;;  %v742_v31 = vrot.slane %v2662_v44, 7  ;;  %v744_v32 = vrot.slane %v736_v11, 7  ;;  %v748_v33 = vrot.slane %v740_v17, 7 }
 0x314   :  { %1030 = vmatprep.mubr.bf16.mxu0 %v802_v23  ;;  %v741_v34 = vrot.slane %v2664_v45, 7  ;;  %v743_v35 = vrot.slane %v735_v14, 7  ;;  %v747_v36 = vrot.slane %v739_v20, 7  ;;  %v746_v37 = vrot.slane %v738_v16, 7  ;;  %v2117_v14 = vld [vmem:[#allocation7 + $0x234] ss:$8 sps:$4 sm:$0xff]  }
 0x315   :  { %1031 = vmatmul.mubr.bf16.vlgmr.msra.gmra.mrb[8].mxu0 %v801_v54  ;;  %v754_v38 = vsel %vm163_vm1, %v742_v31, %v744_v32  ;;  %v756_v39 = vsel %vm163_vm1, %v748_v33, %v742_v31  ;;  %v803_v41 = vpack.c.bf16 %v739_v20, %v737_v22  ;;  %v1268_v43 = vrot.slane %v737_v22, 1  ;;  %v2124_v23 = vld [vmem:[#allocation7 + $0x260] ss:$8 sps:$4 sm:$0xff]   ;;  %v2129_v54 = vld [vmem:[#allocation7 + $0x274] ss:$8 sps:$4 sm:$0xff]  }
 0x316   :  { %1040 = vmatprep.mubr.bf16.mxu0 %v804_v30  ;;  %v1872_v46 = vpack.c.bf16 %v754_v38, %v756_v39  ;;  %v753_v48 = vsel %vm163_vm1, %v741_v34, %v743_v35  ;;  %v755_v49 = vsel %vm163_vm1, %v747_v36, %v741_v34  ;;  %v750_v50 = vsel %vm163_vm1, %v746_v37, %v748_v33  ;;  %v2130_v30 = vld [vmem:[#allocation7 + $0x280] ss:$8 sps:$4 sm:$0xff]   ;;  %v2135_v31 = vld [vmem:[#allocation7 + $0x294] ss:$8 sps:$4 sm:$0xff]   ;;  %v2138_v33 = vld [vmem:[#allocation7 + $0x2a4] ss:$8 sps:$4 sm:$0xff]  }
 0x317   :  { %v1875_v29 = vpack.c.bf16 %v753_v48, %v755_v49  ;;  %v752_v51 = vsel %vm163_vm1, %v744_v32, %v746_v37  ;;  %v2699_v53 = vsel %vm400_vm4, %v1266_v27, %v1268_v43  ;;  %v745_v10 = vrot.slane %v737_v22, 7  ;;  %v2126_v22 = vld [vmem:[#allocation7 + $0x264] ss:$8 sps:$4 sm:$0xff]   ;;  %v2133_v32 = vld [vmem:[#allocation7 + $0x290] ss:$8 sps:$4 sm:$0xff]  }
 0x318   :  { %1873 = vmatprep.mubr.msk.bf16.mxu1 %vm2678_vm11, %v1872_v46  ;;  %v1878_v57 = vpack.c.bf16 %v750_v50, %v752_v51  ;;  %v1265_v58 = vrot.slane %v2662_v44, 1  ;;  %v1267_v59 = vrot.slane %v736_v11, 1  ;;  %v1269_v60 = vrot.slane %v738_v16, 1  ;;  %v2112_v11 = vld [vmem:[#allocation7 + $0x220] ss:$8 sps:$4 sm:$0xff]  }
 0x319   :  { %1876 = vmatmul.mubr.msk.bf16.vlgmr.msra.gmra.mrb[0].mxu1 %vm2678_vm11, %v1875_v29  ;;  %v749_v42 = vsel %vm163_vm1, %v745_v10, %v747_v36  ;;  %v751_v62 = vsel %vm163_vm1, %v743_v35, %v745_v10  ;;  %v2712_v5 = vsel %vm400_vm4, %v1264_v26, %v1266_v27  ;;  %v1271_v63 = vrot.slane %v740_v17, 1  ;;  %v2120_v16 = vld [vmem:[#allocation7 + $0x244] ss:$8 sps:$4 sm:$0xff]   ;;  %v2118_v17 = vld [vmem:[#allocation7 + $0x240] ss:$8 sps:$4 sm:$0xff]  }
 0x31a   :  { %1486 = vmatpush1.bf16.msra.mxu1 %v2106_v47  ;;  %1879 = vmatprep.mubr.msk.bf16.mxu1 %vm2693_vm12, %v1878_v57  ;;  %v1881_v2 = vpack.c.bf16 %v749_v42, %v751_v62  ;;  %v1275_v21 = vsel %vm400_vm4, %v1267_v59, %v1269_v60  ;;  %v1277_v3 = vsel %vm400_vm4, %v1265_v58, %v1267_v59  ;;  %v1270_v28 = vrot.slane %v739_v20, 1  ;;  %v2123_v20 = vld [vmem:[#allocation7 + $0x254] ss:$8 sps:$4 sm:$0xff]   ;;  %v2132_v27 = vld [vmem:[#allocation7 + $0x284] ss:$8 sps:$4 sm:$0xff]  }
 0x31b   :  { %1487 = vmatprep.subr.bf16.mxu1 %v2111_v6  ;;  %v1916_v24 = vpack.c.bf16 %v1275_v21, %v1277_v3  ;;  %v1919_v8 = vpack.c.bf16 %v2699_v53, %v2712_v5  ;;  %v2724_v18 = vsel %vm400_vm4, %v1269_v60, %v1271_v63  ;;  %v2728_v0 = vsel %vm400_vm4, %v1271_v63, %v1265_v58  ;;  %v2136_v34 = vld [vmem:[#allocation7 + $0x2a0] ss:$8 sps:$4 sm:$0xff]   ;;  %v2141_v35 = vld [vmem:[#allocation7 + $0x2b4] ss:$8 sps:$4 sm:$0xff]   ;;  %v2139_v36 = vld [vmem:[#allocation7 + $0x2b0] ss:$8 sps:$4 sm:$0xff]  }
 0x31c   :  { %v1922_v9 = vpack.c.bf16 %v2728_v0, %v2724_v18  ;;  %v2734_v12 = vsel %vm400_vm4, %v1268_v43, %v1270_v28  ;;  %v2738_v13 = vsel %vm400_vm4, %v1270_v28, %v1264_v26  ;;  %v2127_v26 = vld [vmem:[#allocation7 + $0x270] ss:$8 sps:$4 sm:$0xff]   ;;  %v2144_v37 = vld [vmem:[#allocation7 + $0x2c4] ss:$8 sps:$4 sm:$0xff]   ;;  %v2142_v38 = vld [vmem:[#allocation7 + $0x2c0] ss:$8 sps:$4 sm:$0xff]  }
 0x31d   :  { %1041 = vmatmul.mubr.bf16.gmra.mrb[12].mxu0 %v803_v41  ;;  %v1925_v44 = vpack.c.bf16 %v2738_v13, %v2734_v12  ;;  %v2147_v39 = vld [vmem:[#allocation7 + $0x2d4] ss:$8 sps:$4 sm:$0xff]   ;;  %v2150_v41 = vld [vmem:[#allocation7 + $0x2e4] ss:$8 sps:$4 sm:$0xff]   ;;  %v2148_v43 = vld [vmem:[#allocation7 + $0x2e0] ss:$8 sps:$4 sm:$0xff]  }
 0x31e   :  { %1488 = vmatpush1.bf16.msra.mxu1 %v2109_v7  ;;  %v2153_v46 = vld [vmem:[#allocation7 + $0x2f4] ss:$8 sps:$4 sm:$0xff]   ;;  %v2151_v47 = vld [vmem:[#allocation7 + $0x2f0] ss:$8 sps:$4 sm:$0xff]  }
 0x31f   :  { %1489 = vmatprep.subr.bf16.mxu1 %v2114_v4 }
 0x321   :  { %1882 = vmatmul.mubr.msk.bf16.gmra.mrb[4].mxu1 %vm2693_vm12, %v1881_v2 }
 0x322   :  { %1490 = vmatpush1.bf16.msra.mxu1 %v2112_v11  ;;  %1917 = vmatprep.mubr.msk.bf16.mxu1 %vm2745_vm13, %v1916_v24 }
 0x323   :  { %1491 = vmatprep.subr.bf16.mxu1 %v2117_v14 }
 0x326   :  { %1492 = vmatpush1.bf16.msra.mxu1 %v2115_v15 }
 0x327   :  { %1493 = vmatprep.subr.bf16.mxu1 %v2120_v16 }
 0x32a   :  { %1494 = vmatpush1.bf16.msra.mxu1 %v2118_v17 }
 0x32b   :  { %1495 = vmatprep.subr.bf16.mxu1 %v2123_v20 }
 0x32e   :  { %1496 = vmatpush1.bf16.msra.mxu1 %v2121_v55 }
 0x32f   :  { %1497 = vmatprep.subr.bf16.mxu1 %v2126_v22 }
 0x332   :  { %1498 = vmatpush1.bf16.msra.mxu1 %v2124_v23 }
 0x333   :  { %1499 = vmatprep.subr.bf16.mxu1 %v2129_v54 }
 0x336   :  { %1500 = vmatpush1.bf16.msra.mxu1 %v2127_v26 }
 0x337   :  { %1501 = vmatprep.subr.bf16.mxu1 %v2132_v27 }
 0x33a   :  { %1502 = vmatpush1.bf16.msra.mxu1 %v2130_v30 }
 0x33b   :  { %1503 = vmatprep.subr.bf16.mxu1 %v2135_v31 }
 0x33e   :  { %1504 = vmatpush1.bf16.msra.mxu1 %v2133_v32 }
 0x33f   :  { %1505 = vmatprep.subr.bf16.mxu1 %v2138_v33 }
 0x342   :  { %1506 = vmatpush1.bf16.msra.mxu1 %v2136_v34 }
 0x343   :  { %1507 = vmatprep.subr.bf16.mxu1 %v2141_v35 }
 0x346   :  { %1508 = vmatpush1.bf16.msra.mxu1 %v2139_v36 }
 0x347   :  { %1509 = vmatprep.subr.bf16.mxu1 %v2144_v37 }
 0x34a   :  { %1510 = vmatpush1.bf16.msra.mxu1 %v2142_v38 }
 0x34b   :  { %1511 = vmatprep.subr.bf16.mxu1 %v2147_v39 }
 0x34e   :  { %1512 = vmatpush1.bf16.msra.mxu1 %v2145_v40 }
 0x34f   :  { %1513 = vmatprep.subr.bf16.mxu1 %v2150_v41 }
 0x352   :  { %1514 = vmatpush1.bf16.msra.mxu1 %v2148_v43 }
 0x353   :  { %1515 = vmatprep.subr.bf16.mxu1 %v2153_v46 }
 0x356   :  { %1516 = vmatpush1.bf16.msra.mxu1 %v2151_v47 }
 0x359   :  { %1920 = vmatmul.mubr.msk.bf16.vlgmr.msra.gmra.mrb[0].mxu1 %vm2745_vm13, %v1919_v8 }
 0x35a   :  { %1923 = vmatprep.mubr.msk.bf16.mxu1 %vm1921_vm14, %v1922_v9 }
 0x361   :  { %1926 = vmatmul.mubr.msk.bf16.gmra.mrb[4].mxu1 %vm1921_vm14, %v1925_v44 }
 0x3e8   :  { %v1032_v48 = vpop.f32.mrb[8].mxu0 }
 0x3e9   :  { %v1034_v49 = vpop.f32.mrb[9].mxu0 }
 0x3ea   :  { %v1036_v50 = vpop.f32.mrb[10].mxu0 }
 0x3eb   :  { %v1038_v29 = vpop.f32.mrb[11].mxu0 }
 0x3f0   :  { %v1042_v1 = vpop.f32.mrb[12].mxu0 }
 0x3f1   :  { %v1044_v51 = vpop.f32.mrb[13].mxu0 }
 0x3f2   :  { %v1046_v52 = vpop.f32.mrb[14].mxu0 }
 0x3f3   :  { %v1048_v6 = vpop.f32.mrb[15].mxu0 }
 0x42c   :  { %v1519_v53 = vpop.f32.mrb[0].mxu1 }
 0x42d   :  { %v2767_v10 = vadd.f32 %v1519_v53, %v1032_v48  ;;  %v1521_v57 = vpop.f32.mrb[1].mxu1 }
 0x42e   :  { %v2769_v58 = vadd.f32 %v1521_v57, %v1034_v49  ;;  %v1523_v59 = vpop.f32.mrb[2].mxu1 }
 0x42f   :  { %v2771_v60 = vadd.f32 %v1523_v59, %v1036_v50  ;;  %v1525_v42 = vpop.f32.mrb[3].mxu1  ;;  %v1589_v2 = vmul.f32 %v2767_v10, %v2767_v10 }
 0x430   :  { %v2773_v62 = vadd.f32 %v1525_v42, %v1038_v29  ;;  %v1590_v4 = vmul.f32 %v2769_v58, %v2769_v58 }
 0x431   :  { %v1591_v5 = vmul.f32 %v2771_v60, %v2771_v60  ;;  %v1546_v21 = vadd.f32 %v2771_v60, %v2767_v10 }
 0x432   :  { %v1592_v63 = vmul.f32 %v2773_v62, %v2773_v62  ;;  %v1555_v24 = vadd.f32 %v2773_v62, %v2769_v58 }
 0x433   :  { %v1597_v0 = vadd.f32 %v1591_v5, %v1589_v2 }
 0x434   :  { %v1529_v7 = vpop.f32.mrb[4].mxu1  ;;  %v1606_v11 = vadd.f32 %v1592_v63, %v1590_v4 }
 0x435   :  { %v2783_v3 = vadd.f32 %v1529_v7, %v1042_v1  ;;  %v1531_v28 = vpop.f32.mrb[5].mxu1 }
 0x436   :  { %v2789_v8 = vadd.f32 %v1531_v28, %v1044_v51  ;;  %v1533_v18 = vpop.f32.mrb[6].mxu1 }
 0x437   :  { %v1547_v9 = vadd.f32 %v2783_v3, %v1546_v21  ;;  %v1593_v12 = vmul.f32 %v2783_v3, %v2783_v3  ;;  %v2794_v13 = vadd.f32 %v1533_v18, %v1046_v52  ;;  %v1535_v44 = vpop.f32.mrb[7].mxu1 }
 0x438   :  { %v1556_v45 = vadd.f32 %v2789_v8, %v1555_v24  ;;  %v1594_v14 = vmul.f32 %v2789_v8, %v2789_v8  ;;  %v2799_v15 = vadd.f32 %v1535_v44, %v1048_v6 }
 0x439   :  { %v1598_v16 = vadd.f32 %v1597_v0, %v1593_v12  ;;  %v1548_v17 = vadd.f32 %v2794_v13, %v1547_v9  ;;  %v1595_v20 = vmul.f32 %v2794_v13, %v2794_v13 }
 0x43a   :  { %v1607_v55 = vadd.f32 %v1606_v11, %v1594_v14  ;;  %v1557_v22 = vadd.f32 %v2799_v15, %v1556_v45  ;;  %v1596_v23 = vmul.f32 %v2799_v15, %v2799_v15 }
 0x43b   :  { %v1549_v54 = vrot.slane %v1548_v17, 4  ;;  %v1599_v26 = vadd.f32 %v1598_v16, %v1595_v20 }
 0x43c   :  { %v1558_v27 = vrot.slane %v1557_v22, 4  ;;  %v1608_v30 = vadd.f32 %v1607_v55, %v1596_v23 }
 0x43d   :  { %v1550_v31 = vadd.f32 %v1549_v54, %v1548_v17  ;;  %v1600_v32 = vrot.slane %v1599_v26, 4 }
 0x43e   :  { %v1559_v33 = vadd.f32 %v1558_v27, %v1557_v22  ;;  %v1609_v34 = vrot.slane %v1608_v30, 4 }
 0x43f   :  { %v1551_v35 = vrot.slane %v1550_v31, 2  ;;  %v1601_v36 = vadd.f32 %v1600_v32, %v1599_v26 }
 0x440   :  { %v1560_v37 = vrot.slane %v1559_v33, 2  ;;  %v1610_v38 = vadd.f32 %v1609_v34, %v1608_v30 }
 0x441   :  { %v1552_v39 = vadd.f32 %v1551_v35, %v1550_v31  ;;  %v1602_v40 = vrot.slane %v1601_v36, 2 }
 0x442   :  { %v1561_v41 = vadd.f32 %v1560_v37, %v1559_v33  ;;  %v1611_v43 = vrot.slane %v1610_v38, 2 }
 0x443   :  { %v1553_v46 = vrot.slane %v1552_v39, 1  ;;  %v1603_v47 = vadd.f32 %v1602_v40, %v1601_v36 }
 0x444   :  { %v1562_v48 = vrot.slane %v1561_v41, 1  ;;  %v1612_v49 = vadd.f32 %v1611_v43, %v1610_v38 }
 0x445   :  { %v1554_v50 = vadd.f32 %v1553_v46, %v1552_v39  ;;  %v1604_v29 = vrot.slane %v1603_v47, 1 }
 0x446   :  { %v1563_v1 = vadd.f32 %v1562_v48, %v1561_v41  ;;  %v1613_v51 = vrot.slane %v1612_v49, 1 }
 0x447   :  { %1564 = vrot.lane.b32.xlu0 %v1554_v50, %s2303_s10  ;;  %v1605_v52 = vadd.f32 %v1604_v29, %v1603_v47  ;;  %v1645_v29 = vld [vmem:[%s2885_s5] sm:$0x3]  ;;  %s2312_s5 = smov [#allocation11]  }
 0x448   :  { %1566 = vrot.lane.b32.xlu1 %v1563_v1, %s2303_s10  ;;  %v1614_v6 = vadd.f32 %v1613_v51, %v1612_v49 }
 0x44b   :  { %1615 = vrot.lane.b32.xlu0 %v1605_v52, %s2303_s10 }
 0x44c   :  { %1617 = vrot.lane.b32.xlu1 %v1614_v6, %s2303_s10 }
 0x4b9   :  { %v1565_v53 = vpop.permute.xlu0 %1564 }
 0x4ba   :  { %v1567_v57 = vpop.permute.xlu1 %1566 }
 0x4bb   :  { %v1568_v59 = vsel %vm555_vm7, %v1565_v53, %v1567_v57  ;;  %v1569_v42 = vsel %vm555_vm7, %v1567_v57, %v1565_v53 }
 0x4bc   :  { %v1570_v5 = vadd.f32 %v1569_v42, %v1554_v50  ;;  %v1571_v63 = vadd.f32 %v1568_v59, %v1563_v1  ;;  %v1666_v42 = vld [vmem:[%s2886_s6] sm:$0x3]  ;;  %s1763_s6 = sshll.u32 %s2312_s5, 4  ;;  %s1764_s6 = int_to_ptr.vmem [resolvable:$true] %s1763_s6 }
 0x4bd   :  { %v1616_v7 = vpop.permute.xlu0 %1615  ;;  %s2268_s18 = scalar_lea.vmem %s1764_s6, 1024  ;;  %p2273_p13 = scmp.lt.s32.totalorder %s1764_s6, %s1764_s6 }
 0x4be   :  { %1572 = vrot.lane.b32.xlu0 %v1570_v5, %s2308_s8  ;;  %1574 = vrot.lane.b32.xlu1 %v1571_v63, %s2308_s8  ;;  %v1618_v2 = vpop.permute.xlu1 %1617  ;;  %p2269_p12 = scmp.ne.s32.totalorder %s1764_s6, %s2268_s18  ;;  %p2274_p0 = scmp.lt.s32.totalorder %s2268_s18, %s2268_s18 }
 0x4bf   :  { %v1619_v21 = vsel %vm555_vm7, %v1616_v7, %v1618_v2  ;;  %v1620_v28 = vsel %vm555_vm7, %v1618_v2, %v1616_v7 }
 0x4c0   :  { %v1621_v4 = vadd.f32 %v1620_v28, %v1605_v52  ;;  %v1622_v24 = vadd.f32 %v1619_v21, %v1614_v6  ;;  %p2275_p1 = por %p2274_p0, %p2273_p13 }
 0x4c2   :  { %1623 = vrot.lane.b32.xlu0 %v1621_v4, %s2308_s8  ;;  %1625 = vrot.lane.b32.xlu1 %v1622_v24, %s2308_s8  ;;  %p2276_p2 = pnand %p2275_p1, %p2269_p12 }
 0x530   :  { %v1573_v18 = vpop.permute.xlu0 %1572  ;;  %v1575_v0 = vpop.permute.xlu1 %1574 }
 0x531   :  { %v1576_v9 = vsel %vm564_vm8, %v1573_v18, %v1575_v0  ;;  %v1577_v12 = vsel %vm564_vm8, %v1575_v0, %v1573_v18 }
 0x532   :  { %v1578_v44 = vadd.f32 %v1577_v12, %v1570_v5  ;;  %v1579_v11 = vadd.f32 %v1576_v9, %v1571_v63  ;;  %v1734_v12 = vld [vmem:[#allocation10] sm:$0xff] }
 0x534   :  { %v1624_v45 = vpop.permute.xlu0 %1623  ;;  %1580 = vrot.lane.b32.xlu0 %v1578_v44, %s2309_s22  ;;  %1582 = vrot.lane.b32.xlu1 %v1579_v11, %s2309_s22  ;;  %v1626_v14 = vpop.permute.xlu1 %1625 }
 0x535   :  { %v1627_v16 = vsel %vm564_vm8, %v1624_v45, %v1626_v14  ;;  %v1628_v17 = vsel %vm564_vm8, %v1626_v14, %v1624_v45  ;;  %v1736_v45 = vld [vmem:[#allocation10 + $0x10] sm:$0xff] }
 0x536   :  { %v1629_v20 = vadd.f32 %v1628_v17, %v1621_v4  ;;  %v1630_v55 = vadd.f32 %v1627_v16, %v1622_v24  ;;  %v1738_v17 = vld [vmem:[#allocation10 + $0x20] sm:$0xff] }
 0x538   :  { %1631 = vrot.lane.b32.xlu0 %v1629_v20, %s2309_s22  ;;  %1633 = vrot.lane.b32.xlu1 %v1630_v55, %s2309_s22 }
 0x5a6   :  { %v1581_v22 = vpop.permute.xlu0 %1580  ;;  %v1583_v23 = vpop.permute.xlu1 %1582 }
 0x5a7   :  { %v1584_v54 = vsel %vm573_vm9, %v1581_v22, %v1583_v23  ;;  %v1585_v26 = vsel %vm573_vm9, %v1583_v23, %v1581_v22 }
 0x5a8   :  { %v1586_v27 = vadd.f32 %v1585_v26, %v1578_v44  ;;  %v1587_v30 = vadd.f32 %v1584_v54, %v1579_v11 }
 0x5aa   :  { %v1588_v31 = vadd.f32 %v1587_v30, %v1586_v27  ;;  %v1632_v32 = vpop.permute.xlu0 %1631  ;;  %v1634_v33 = vpop.permute.xlu1 %1633 }
 0x5ab   :  { %v1635_v34 = vsel %vm573_vm9, %v1632_v32, %v1634_v33  ;;  %v1636_v35 = vsel %vm573_vm9, %v1634_v33, %v1632_v32 }
 0x5ac   :  { %v1640_v36 = vmul.f32 0.001953125, %v1588_v31  ;;  %v1637_v37 = vadd.f32 %v1636_v35, %v1629_v20  ;;  %v1638_v38 = vadd.f32 %v1635_v34, %v1630_v55  ;;  %v1740_v20 = vld [vmem:[#allocation10 + $0x30] sm:$0xff] }
 0x5ae   :  { %v1639_v39 = vadd.f32 %v1638_v38, %v1637_v37  ;;  %v1642_v40 = vmul.f32 %v1640_v36, %v1640_v36 }
 0x5b0   :  { %v1641_v41 = vmul.f32 0.001953125, %v1639_v39 }
 0x5b2   :  { %v1643_v43 = vsub.f32 %v1641_v41, %v1642_v40 }
 0x5b4   :  { %v1644_v46 = vmax.f32 %v1643_v43, 0.0 }
 0x5b6   :  { %v1646_v47 = vadd.f32 1e-05, %v1644_v46 }
 0x5b8   :  { %2156 = vrsqrt.f32 %v1646_v47 }
 0x5c2   :  { %v2157_v48 = vpop.eup %2156 }
 0x5c3   :  { %v1649_v49 = vcombine.low %v2157_v48, %v2157_v48 }
 0x5c5   :  { %v1656_v50 = vrot.slane %v1649_v49, %v2632_v19 }
 0x5c7   :  { %v1663_v61 = vrot.slane %v1656_v50, %v2632_v19 }
 0x5c9   :  { %v1665_v1 = vmul.f32 %v1663_v61, %v1645_v29 }
 0x5cb   :  { %v1671_v51 = vrot.slane %v1665_v1, %v2639_v56  ;;  %v1675_v52 = vrot.slane %v1665_v1, %v2642_v25 }
 0x5cd   :  { %v1678_v6 = vmul.f32 %v1671_v51, %v1640_v36  ;;  %v1679_v53 = vmul.f32 %v1675_v52, %v1640_v36  ;;  %v1699_v7 = vmul.f32 %v2767_v10, %v1671_v51  ;;  %v1700_v2 = vmul.f32 %v2769_v58, %v1675_v52 }
 0x5ce   :  { %v1701_v21 = vmul.f32 %v2771_v60, %v1671_v51  ;;  %v1702_v28 = vmul.f32 %v2773_v62, %v1675_v52  ;;  %v1703_v18 = vmul.f32 %v2783_v3, %v1671_v51  ;;  %v1704_v0 = vmul.f32 %v2789_v8, %v1675_v52  ;;  %v1735_v60 = vld [vmem:[#allocation10 + $0x8] sm:$0xff]  ;;  %v1737_v62 = vld [vmem:[#allocation10 + $0x18] sm:$0xff] }
 0x5cf   :  { %v1682_v57 = vcombine.low %v1678_v6, %v1679_v53  ;;  %v1705_v9 = vmul.f32 %v2794_v13, %v1671_v51  ;;  %v1739_v3 = vld [vmem:[#allocation10 + $0x28] sm:$0xff] }
 0x5d1   :  { %v1689_v59 = vrot.slane %v1682_v57, %v2632_v19 }
 0x5d3   :  { %v1696_v5 = vrot.slane %v1689_v59, %v2632_v19  ;;  %v1706_v19 = vmul.f32 %v2799_v15, %v1675_v52  ;;  %v1741_v15 = vld [vmem:[#allocation10 + $0x38] sm:$0xff] }
 0x5d5   :  { %v1698_v63 = vsub.f32 %v1666_v42, %v1696_v5 }
 0x5d7   :  { %v1711_v4 = vrot.slane %v1698_v63, %v2639_v56  ;;  %v1715_v24 = vrot.slane %v1698_v63, %v2642_v25 }
 0x5d9   :  { %v1718_v10 = vadd.f32 %v1711_v4, %v1699_v7  ;;  %v1719_v44 = vadd.f32 %v1715_v24, %v1700_v2  ;;  %v1720_v58 = vadd.f32 %v1711_v4, %v1701_v21  ;;  %v1721_v11 = vadd.f32 %v1715_v24, %v1702_v28 }
 0x5da   :  { %v1722_v14 = vadd.f32 %v1711_v4, %v1703_v18  ;;  %v1723_v56 = vadd.f32 %v1715_v24, %v1704_v0  ;;  %v1724_v16 = vadd.f32 %v1711_v4, %v1705_v9  ;;  %v1725_v25 = vadd.f32 %v1715_v24, %v1706_v19 }
 0x5db   :  { %v1726_v8 = vmax.f32 %v1718_v10, 0.0  ;;  %v1727_v55 = vmax.f32 %v1719_v44, 0.0  ;;  %v1728_v13 = vmax.f32 %v1720_v58, 0.0  ;;  %v1729_v22 = vmax.f32 %v1721_v11, 0.0 }
 0x5dc   :  { %v1730_v23 = vmax.f32 %v1722_v14, 0.0  ;;  %v1731_v54 = vmax.f32 %v1723_v56, 0.0  ;;  %v1732_v26 = vmax.f32 %v1724_v16, 0.0  ;;  %v1733_v27 = vmax.f32 %v1725_v25, 0.0 }
 0x5dd   :  { %v1742_v30 = vadd.f32 %v1734_v12, %v1726_v8  ;;  %v1743_v31 = vadd.f32 %v1735_v60, %v1727_v55  ;;  %v1744_v32 = vadd.f32 %v1736_v45, %v1728_v13  ;;  %v1745_v33 = vadd.f32 %v1737_v62, %v1729_v22 }
 0x5de   :  { %v1746_v34 = vadd.f32 %v1738_v17, %v1730_v23  ;;  %v1747_v35 = vadd.f32 %v1739_v3, %v1731_v54  ;;  %v1748_v36 = vadd.f32 %v1740_v20, %v1732_v26  ;;  %v1749_v37 = vadd.f32 %v1741_v15, %v1733_v27 }
 0x5df   :  { %1750 = vst [vmem:[#allocation11] sm:$0xff] %v1742_v30  ;;  %1751 = vst [vmem:[#allocation11 + $0x8] sm:$0xff] %v1743_v31 }
 0x5e0   :  { %1752 = vst [vmem:[#allocation11 + $0x10] sm:$0xff] %v1744_v32  ;;  %1753 = vst [vmem:[#allocation11 + $0x18] sm:$0xff] %v1745_v33 }
 0x5e1   :  { %1754 = vst [vmem:[#allocation11 + $0x20] sm:$0xff] %v1746_v34  ;;  %1755 = vst [vmem:[#allocation11 + $0x28] sm:$0xff] %v1747_v35 }
 0x5e2   :  { %1756 = vst [vmem:[#allocation11 + $0x30] sm:$0xff] %v1748_v36  ;;  %1757 = vst [vmem:[#allocation11 + $0x38] sm:$0xff] %v1749_v37 }
 0x5e3   :  { %2279 = shalt.err (!%p2276_p2)
}
 0x5e4   :  { %s2280_s17 = scalar_lea.hbm %s2889_s9, 1024 }
 0x5e5   :  { %p2281_p3 = scmp.ne.s32.totalorder %s2889_s9, %s2280_s17  ;;  %p2284_p4 = scmp.lt.u32.totalorder %s2280_s17, %s2889_s9 }
 0x5e7   :  { %p2286_p5 = pnand %p2284_p4, %p2281_p3 }
 0x5e9   :  { %2289 = shalt.err (!%p2286_p5)
}
 0x5ea   :  { %1769 = dma.vmem_to_hbm [thread:$0]  %s1764_s6, 1024, %s2889_s9, [#allocation4], %s2302_s1, %s2302_s1, %s2303_s10  }
 0x5eb   :  { %2296 = dma.done.wait [#allocation4], 1024  }
 0x5ec   :  { %2297 = vsyncadd [#allocation4], 4294966272 }
 0x5ed   :  { %1773 = vsyncpa [#allocation3], 1 }
 0x5ee   :  { %1774 = vsyncpa [#allocation6], 1 }
 0x5ef   :  { %1775 = vsyncpa [#allocation9], 1 }
 0x5f0   :  { %1776 = vsyncpa [#allocation4], 1 }

</bundles_post_ra>
